<compile_context>
chip_gen: v7x
topology: tpu7x:2x2x1
jax: 0.10.0
libtpu: 0.0.40
codegen_flags: <defaults>
</compile_context>

<pallas_src>
import functools

import jax
import jax.numpy as jnp
from jax import lax
from jax.experimental import pallas as pl
from jax.experimental.pallas import tpu as pltpu

BN_EPS = 1e-5
PAD_D = 128    # feature dim padded to one lane group (max real dim is 48)

# node counts per mesh level (6 = coarsest input level, 0 = finest output level)
LEVEL_NODES = {6: 4, 5: 6, 4: 8, 3: 10, 2: 12, 1: 14, 0: 16}

# (out_level, in_level, apply_bn, apply_relu) in forward order:
#   slin0, sunpool1, slin1, sunpool2, ..., slin5, sunpool6, slin6
LAYER_DEFS = [
    (6, 6, True,  True),    # slin0 + batch0l + relu (+dropout)
    (5, 6, False, False),   # sunpool1
    (5, 5, True,  True),    # slin1 + batch1l + relu (+dropout)
    (4, 5, False, False),   # sunpool2
    (4, 4, True,  True),    # slin2 + batch2l + relu (+dropout)
    (3, 4, False, False),   # sunpool3
    (3, 3, True,  True),    # slin3 + batch3l + relu (+dropout)
    (2, 3, False, False),   # sunpool4
    (2, 2, True,  True),    # slin4 + batch4l + relu (+dropout)
    (1, 2, False, False),   # sunpool5
    (1, 1, True,  True),    # slin5 + batch5l + relu (no dropout)
    (0, 1, False, False),   # sunpool6
    (0, 0, False, False),   # slin6 (no bn / relu; centering folded into W)
]
N_LAYERS = len(LAYER_DEFS)


def _round_up(n, m):
    return ((n + m - 1) // m) * m


# ----------------------------------------------------------------------------
# Fused Pallas kernel: 13 masked-Bayesian linears (+BN/ReLU), centering folded
# into the last weight; per-layer weight tiles manually double-buffered.
# ----------------------------------------------------------------------------
def _decoder_kernel(x_ref, gamma_ref, beta_ref, w_hbm, y_ref, wbuf, sem,
                    *, batch):
    pad_b = x_ref.shape[0]
    x = x_ref[...]                                            # (pad_b, 128) f32
    row_mask = (lax.broadcasted_iota(jnp.int32, (pad_b, PAD_D), 0)
                < batch).astype(jnp.float32)
    inv_b = 1.0 / float(batch)

    def start_fetch(i, slot):
        pltpu.make_async_copy(w_hbm.at[i], wbuf.at[slot], sem.at[slot]).start()

    def wait_fetch(i, slot):
        pltpu.make_async_copy(w_hbm.at[i], wbuf.at[slot], sem.at[slot]).wait()

    # Prime the pipeline with layer 0's 32 KiB weight tile.
    start_fetch(0, 0)

    bn_idx = 0
    for i, (_, _, apply_bn, apply_relu) in enumerate(LAYER_DEFS):
        slot = i & 1
        wait_fetch(i, slot)
        if i + 1 < N_LAYERS:
            start_fetch(i + 1, (i + 1) & 1)     # prefetch next layer's weight

        # bf16 x bf16 -> f32 accumulate on the MXU.
        y = jnp.dot(x.astype(jnp.bfloat16), wbuf[slot],
                    preferred_element_type=jnp.float32)        # (pad_b, 128)

        if apply_bn:
            # BatchNorm1d, training mode (batch stats, biased var, two-pass).
            # Padded batch rows of y are exactly zero, so masked row sums / B
            # give the true batch statistics.
            mean = jnp.sum(y, axis=0, keepdims=True) * inv_b
            yc = (y - mean) * row_mask
            var = jnp.sum(yc * yc, axis=0, keepdims=True) * inv_b
            scale = gamma_ref[bn_idx:bn_idx + 1, :] * lax.rsqrt(var + BN_EPS)
            y = yc * scale + beta_ref[bn_idx:bn_idx + 1, :]
            bn_idx += 1
        if apply_relu:
            y = jnp.maximum(y, 0.0)
        if apply_bn:
            y = y * row_mask          # keep padded batch rows at exactly zero
        # TODO(synk): nn.Dropout(0.1) is identity here (deterministic forward).
        x = y

    y_ref[...] = x


def bayesian_decoder_forward(x, params):
    """x: (B, LEVEL_NODES[6]*3) f32 -> (y: (B, LEVEL_NODES[0]*3), kl_last)."""
    B, d_in = x.shape
    pad_b = max(8, _round_up(B, 8))
    if pad_b > 1024:
        # TODO(synk): for very large batches, add a batch grid axis with a
        # cross-tile BN statistics reduction (BN couples the whole batch).
        raise ValueError("batch too large for single-block BN kernel")
    x_pad = jnp.zeros((pad_b, PAD_D), jnp.float32).at[:B, :d_in].set(x)

    y_pad = pl.pallas_call(
        functools.partial(_decoder_kernel, batch=B),
        out_shape=jax.ShapeDtypeStruct((pad_b, PAD_D), jnp.float32),
        in_specs=[
            pl.BlockSpec(memory_space=pltpu.MemorySpace.VMEM),   # x
            pl.BlockSpec(memory_space=pltpu.MemorySpace.VMEM),   # gamma slab
            pl.BlockSpec(memory_space=pltpu.MemorySpace.VMEM),   # beta slab
            pl.BlockSpec(memory_space=pl.ANY),                   # weights (HBM)
        ],
        out_specs=pl.BlockSpec(memory_space=pltpu.MemorySpace.VMEM),
        scratch_shapes=[
            pltpu.VMEM((2, PAD_D, PAD_D), jnp.bfloat16),         # w double-buf
            pltpu.SemaphoreType.DMA((2,)),
        ],
    )(x_pad, params["gamma"], params["beta"], params["w"])

    y = y_pad[:B, :LEVEL_NODES[0] * 3]
    # torch forward returns the *last* layer's KL (data-independent -> init).
    return y, params["kl_last"]


# ----------------------------------------------------------------------------
# Deterministic parameter init (synthetic; shapes follow the module __init__).
# All parameter-only math (mask*mu, transpose, padding, KL, centering fold,
# bf16 cast) is done here, once, outside the kernel.
# ----------------------------------------------------------------------------
def init_decoder_params(seed=0):
    key = jax.random.PRNGKey(seed)
    ws, gammas, betas, kls = [], [], [], []
    for (lo, li, apply_bn, _) in LAYER_DEFS:
        n_out, n_in = LEVEL_NODES[lo], LEVEL_NODES[li]
        d_out, d_in = n_out * 3, n_in * 3
        key, k_mask, k_mu = jax.random.split(key, 3)
        idx = jax.random.bernoulli(k_mask, 0.4, (n_out, n_in)).astype(jnp.float32)
        rows = jnp.arange(n_out)
        idx = idx.at[rows, rows % n_in].set(1.0)          # ensure connectivity
        mask = jnp.kron(idx, jnp.ones((3, 3), jnp.float32))   # (d_out, d_in)
        mu = 0.1 * jax.random.normal(k_mu, (d_out, d_in), jnp.float32)
        rho = jnp.full((d_out, d_in), -100.0, jnp.float32)    # ctor arg -100
        sigma = jnp.exp(rho)                                  # ~0 -> mean fwd

        # KL( N(mu, sigma^2) || N(0,1) ) over masked weights (data-independent)
        kls.append(jnp.sum(mask * 0.5 * (sigma * sigma + mu * mu - 1.0 - 2.0 * rho)))

        # effective weight, pre-transposed to (Din, Dout), padded to 128x128
        w_eff = (mask * mu).T
        w_pad = jnp.zeros((PAD_D, PAD_D), jnp.float32).at[:d_in, :d_out].set(w_eff)
        ws.append(w_pad)

        if apply_bn:
            gammas.append(jnp.zeros((PAD_D,), jnp.float32).at[:d_out].set(1.0))
            betas.append(jnp.zeros((PAD_D,), jnp.float32))

    # Fold the vertex-centering projection into the last layer's weight:
    #   (x @ W13) @ (I - E) = x @ (W13 @ (I - E))   (exact: no BN/ReLU after).
    # (x @ E)[:, 3v+c] = mean over vertices of coordinate c.
    d_fin = LEVEL_NODES[0] * 3
    j = jnp.arange(PAD_D)
    same_coord = (j[:, None] % 3) == (j[None, :] % 3)
    active = (j[:, None] < d_fin) & (j[None, :] < d_fin)
    E = jnp.where(same_coord & active, 1.0 / LEVEL_NODES[0], 0.0).astype(jnp.float32)
    ws[-1] = ws[-1] @ (jnp.eye(PAD_D, dtype=jnp.float32) - E)

    # Dense gamma/beta slabs (6 BN layers, padded to 8 sublane rows).
    n_bn = len(gammas)
    gamma = jnp.zeros((8, PAD_D), jnp.float32).at[:n_bn].set(jnp.stack(gammas))
    beta = jnp.zeros((8, PAD_D), jnp.float32).at[:n_bn].set(jnp.stack(betas))

    return dict(
        w=jnp.stack(ws).astype(jnp.bfloat16),   # (13, 128, 128) bf16 in HBM
        gamma=gamma,                            # (8, 128) f32 (rows 0..5 used)
        beta=beta,                              # (8, 128) f32 (rows 0..5 used)
        kl_last=kls[-1],                        # KL of slin6 (torch return val)
    )


# ----------------------------------------------------------------------------
# Pure-JAX reference using the same packed params (for correctness check).
# ----------------------------------------------------------------------------
def _reference_forward(x, params):
    B, d_in = x.shape
    w, gamma, beta = params["w"], params["gamma"], params["beta"]
    xp = jnp.zeros((B, PAD_D), jnp.float32).at[:, :d_in].set(x)
    bn_idx = 0
    for i, (_, _, apply_bn, apply_relu) in enumerate(LAYER_DEFS):
        y = jnp.dot(xp.astype(jnp.bfloat16), w[i],
                    preferred_element_type=jnp.float32)
        if apply_bn:
            mean = jnp.mean(y, axis=0, keepdims=True)
            yc = y - mean
            var = jnp.mean(yc * yc, axis=0, keepdims=True)
            scale = gamma[bn_idx:bn_idx + 1, :] * lax.rsqrt(var + BN_EPS)
            y = yc * scale + beta[bn_idx:bn_idx + 1, :]
            bn_idx += 1
        if apply_relu:
            y = jnp.maximum(y, 0.0)
        xp = y
    return xp[:, :LEVEL_NODES[0] * 3]


# ----------------------------------------------------------------------------
if __name__ == "__main__":
    params = init_decoder_params(seed=0)

    B = 2
    d_in = LEVEL_NODES[6] * 3    # coarsest level: 4 nodes * 3 coords = 12
    x = jax.random.normal(jax.random.PRNGKey(0), (B, d_in), jnp.float32)

    fwd = jax.jit(bayesian_decoder_forward)
    y, kl = fwd(x, params)
    jax.block_until_ready((y, kl))

    assert y.shape == (B, LEVEL_NODES[0] * 3)
    assert y.dtype == jnp.float32
    assert bool(jnp.isfinite(kl))
    assert bool(jnp.all(jnp.isfinite(y)))

    # Match the pure-JAX reference built from the same packed (bf16) params.
    y_ref = jax.jit(_reference_forward)(x, params)
    jax.block_until_ready(y_ref)
    assert bool(jnp.allclose(y, y_ref, rtol=1e-2, atol=1e-2))

    # Vertex centering is folded into the (bf16) last weight -> approx zero
    # per-coordinate vertex means (loose tolerance due to bf16 quantization).
    assert float(jnp.max(jnp.abs(jnp.mean(y.reshape(B, -1, 3), axis=1)))) < 1e-2

    print("KERNEL_OK")
</pallas_src>

<mosaic_0001>
module attributes {stable_mosaic.version = 11 : i64} {
  func.func @_decoder_kernel(%arg0: memref<8x128xf32, #tpu.memory_space<vmem>>, %arg1: memref<8x128xf32, #tpu.memory_space<vmem>>, %arg2: memref<8x128xf32, #tpu.memory_space<vmem>>, %arg3: memref<13x128x128xbf16, #tpu.memory_space<any>>, %arg4: memref<8x128xf32, #tpu.memory_space<vmem>>, %arg5: memref<2x128x128xbf16, #tpu.memory_space<vmem>>, %arg6: memref<2x!tpu.dma_semaphore, #tpu.memory_space<semaphore_mem>>) attributes {dimension_semantics = [], scalar_prefetch = 0 : i64, scratch_operands = 2 : i64, tpu.core_type = #tpu.core_type<tc>} {
    %c0 = arith.constant 0 : index
    %c0_0 = arith.constant 0 : index
    %0 = vector.load %arg0[%c0, %c0_0] : memref<8x128xf32, #tpu.memory_space<vmem>>, vector<8x128xf32>
    %1 = tpu.iota {dimensions = array<i32: 0>} : vector<8x128xi32>
    %c2_i32 = arith.constant 2 : i32
    %2 = vector.broadcast %c2_i32 : i32 to vector<8x128xi32>
    %3 = arith.cmpi slt, %1, %2 : vector<8x128xi32>
    %4 = arith.extui %3 : vector<8x128xi1> to vector<8x128xi32>
    %5 = arith.sitofp %4 : vector<8x128xi32> to vector<8x128xf32>
    %c0_i32 = arith.constant 0 : i32
    %c0_i32_1 = arith.constant 0 : i32
    %c0_i32_2 = arith.constant 0 : i32
    %c0_i32_3 = arith.constant 0 : i32
    %c0_i32_4 = arith.constant 0 : i32
    %6 = tpu.memref_slice %arg3[%c0_i32, %c0_i32_3, %c0_i32_4] : memref<13x128x128xbf16, #tpu.memory_space<any>> -> memref<1x128x128xbf16, #tpu.memory_space<any>>
    %7 = tpu.memref_squeeze %6 : memref<1x128x128xbf16, #tpu.memory_space<any>> -> memref<128x128xbf16, #tpu.memory_space<any>>
    %c0_i32_5 = arith.constant 0 : i32
    %c0_i32_6 = arith.constant 0 : i32
    %8 = tpu.memref_slice %arg5[%c0_i32_1, %c0_i32_5, %c0_i32_6] : memref<2x128x128xbf16, #tpu.memory_space<vmem>> -> memref<1x128x128xbf16, #tpu.memory_space<vmem>>
    %9 = tpu.memref_squeeze %8 : memref<1x128x128xbf16, #tpu.memory_space<vmem>> -> memref<128x128xbf16, #tpu.memory_space<vmem>>
    %10 = tpu.memref_slice %arg6[%c0_i32_2] : memref<2x!tpu.dma_semaphore, #tpu.memory_space<semaphore_mem>> -> memref<1x!tpu.dma_semaphore, #tpu.memory_space<semaphore_mem>>
    %11 = tpu.memref_squeeze %10 : memref<1x!tpu.dma_semaphore, #tpu.memory_space<semaphore_mem>> -> memref<!tpu.dma_semaphore, #tpu.memory_space<semaphore_mem>>
    tpu.enqueue_dma source(%7 : memref<128x128xbf16, #tpu.memory_space<any>>) target(%9 : memref<128x128xbf16, #tpu.memory_space<vmem>>) target_semaphore(%11 : memref<!tpu.dma_semaphore, #tpu.memory_space<semaphore_mem>>)
    %c0_i32_7 = arith.constant 0 : i32
    %c0_i32_8 = arith.constant 0 : i32
    %c0_i32_9 = arith.constant 0 : i32
    %c0_i32_10 = arith.constant 0 : i32
    %c0_i32_11 = arith.constant 0 : i32
    %12 = tpu.memref_slice %arg3[%c0_i32_7, %c0_i32_10, %c0_i32_11] : memref<13x128x128xbf16, #tpu.memory_space<any>> -> memref<1x128x128xbf16, #tpu.memory_space<any>>
    %13 = tpu.memref_squeeze %12 : memref<1x128x128xbf16, #tpu.memory_space<any>> -> memref<128x128xbf16, #tpu.memory_space<any>>
    %c0_i32_12 = arith.constant 0 : i32
    %c0_i32_13 = arith.constant 0 : i32
    %14 = tpu.memref_slice %arg5[%c0_i32_8, %c0_i32_12, %c0_i32_13] : memref<2x128x128xbf16, #tpu.memory_space<vmem>> -> memref<1x128x128xbf16, #tpu.memory_space<vmem>>
    %15 = tpu.memref_squeeze %14 : memref<1x128x128xbf16, #tpu.memory_space<vmem>> -> memref<128x128xbf16, #tpu.memory_space<vmem>>
    %16 = tpu.memref_slice %arg6[%c0_i32_9] : memref<2x!tpu.dma_semaphore, #tpu.memory_space<semaphore_mem>> -> memref<1x!tpu.dma_semaphore, #tpu.memory_space<semaphore_mem>>
    %17 = tpu.memref_squeeze %16 : memref<1x!tpu.dma_semaphore, #tpu.memory_space<semaphore_mem>> -> memref<!tpu.dma_semaphore, #tpu.memory_space<semaphore_mem>>
    tpu.wait_dma2 semaphore(%17 : memref<!tpu.dma_semaphore, #tpu.memory_space<semaphore_mem>>) src(%13 : memref<128x128xbf16, #tpu.memory_space<any>>) dst(%15 : memref<128x128xbf16, #tpu.memory_space<vmem>>)
    %c1_i32 = arith.constant 1 : i32
    %c1_i32_14 = arith.constant 1 : i32
    %c1_i32_15 = arith.constant 1 : i32
    %c0_i32_16 = arith.constant 0 : i32
    %c0_i32_17 = arith.constant 0 : i32
    %18 = tpu.memref_slice %arg3[%c1_i32, %c0_i32_16, %c0_i32_17] : memref<13x128x128xbf16, #tpu.memory_space<any>> -> memref<1x128x128xbf16, #tpu.memory_space<any>>
    %19 = tpu.memref_squeeze %18 : memref<1x128x128xbf16, #tpu.memory_space<any>> -> memref<128x128xbf16, #tpu.memory_space<any>>
    %c0_i32_18 = arith.constant 0 : i32
    %c0_i32_19 = arith.constant 0 : i32
    %20 = tpu.memref_slice %arg5[%c1_i32_14, %c0_i32_18, %c0_i32_19] : memref<2x128x128xbf16, #tpu.memory_space<vmem>> -> memref<1x128x128xbf16, #tpu.memory_space<vmem>>
    %21 = tpu.memref_squeeze %20 : memref<1x128x128xbf16, #tpu.memory_space<vmem>> -> memref<128x128xbf16, #tpu.memory_space<vmem>>
    %22 = tpu.memref_slice %arg6[%c1_i32_15] : memref<2x!tpu.dma_semaphore, #tpu.memory_space<semaphore_mem>> -> memref<1x!tpu.dma_semaphore, #tpu.memory_space<semaphore_mem>>
    %23 = tpu.memref_squeeze %22 : memref<1x!tpu.dma_semaphore, #tpu.memory_space<semaphore_mem>> -> memref<!tpu.dma_semaphore, #tpu.memory_space<semaphore_mem>>
    tpu.enqueue_dma source(%19 : memref<128x128xbf16, #tpu.memory_space<any>>) target(%21 : memref<128x128xbf16, #tpu.memory_space<vmem>>) target_semaphore(%23 : memref<!tpu.dma_semaphore, #tpu.memory_space<semaphore_mem>>)
    %24 = arith.truncf %0 : vector<8x128xf32> to vector<8x128xbf16>
    %c0_20 = arith.constant 0 : index
    %c0_21 = arith.constant 0 : index
    %c0_22 = arith.constant 0 : index
    %25 = vector.load %arg5[%c0_20, %c0_21, %c0_22] : memref<2x128x128xbf16, #tpu.memory_space<vmem>>, vector<1x128x128xbf16>
    %26 = vector.shape_cast %25 : vector<1x128x128xbf16> to vector<128x128xbf16>
    %cst = arith.constant dense<0.000000e+00> : vector<8x128xf32>
    %27 = tpu.matmul %24, %26, %cst {dimension_numbers = #tpu.dot_dimension_numbers<[1], [0], [0], [1], [0, 0, 1, 1], [], []>} : vector<8x128xbf16>, vector<128x128xbf16>, vector<8x128xf32> -> vector<8x128xf32>
    %cst_23 = arith.constant dense<0.000000e+00> : vector<128xf32>
    %28 = vector.multi_reduction <add>, %27, %cst_23 [0] : vector<8x128xf32> to vector<128xf32>
    %29 = vector.shape_cast %28 : vector<128xf32> to vector<1x128xf32>
    %cst_24 = arith.constant 5.000000e-01 : f32
    %30 = vector.broadcast %cst_24 : f32 to vector<1x128xf32>
    %31 = arith.mulf %29, %30 : vector<1x128xf32>
    %32 = vector.broadcast %31 : vector<1x128xf32> to vector<8x128xf32>
    %33 = arith.subf %27, %32 : vector<8x128xf32>
    %34 = arith.mulf %33, %5 : vector<8x128xf32>
    %35 = arith.mulf %34, %34 : vector<8x128xf32>
    %cst_25 = arith.constant dense<0.000000e+00> : vector<128xf32>
    %36 = vector.multi_reduction <add>, %35, %cst_25 [0] : vector<8x128xf32> to vector<128xf32>
    %37 = vector.shape_cast %36 : vector<128xf32> to vector<1x128xf32>
    %cst_26 = arith.constant 5.000000e-01 : f32
    %38 = vector.broadcast %cst_26 : f32 to vector<1x128xf32>
    %39 = arith.mulf %37, %38 : vector<1x128xf32>
    %c0_27 = arith.constant 0 : index
    %c0_28 = arith.constant 0 : index
    %40 = vector.load %arg1[%c0_27, %c0_28] : memref<8x128xf32, #tpu.memory_space<vmem>>, vector<1x128xf32>
    %cst_29 = arith.constant 9.99999974E-6 : f32
    %41 = vector.broadcast %cst_29 : f32 to vector<1x128xf32>
    %42 = arith.addf %39, %41 : vector<1x128xf32>
    %43 = math.rsqrt %42 : vector<1x128xf32>
    %44 = arith.mulf %40, %43 : vector<1x128xf32>
    %45 = vector.broadcast %44 : vector<1x128xf32> to vector<8x128xf32>
    %46 = arith.mulf %34, %45 : vector<8x128xf32>
    %c0_30 = arith.constant 0 : index
    %c0_31 = arith.constant 0 : index
    %47 = vector.load %arg2[%c0_30, %c0_31] : memref<8x128xf32, #tpu.memory_space<vmem>>, vector<1x128xf32>
    %48 = vector.broadcast %47 : vector<1x128xf32> to vector<8x128xf32>
    %49 = arith.addf %46, %48 : vector<8x128xf32>
    %cst_32 = arith.constant 0.000000e+00 : f32
    %50 = vector.broadcast %cst_32 : f32 to vector<8x128xf32>
    %51 = arith.maximumf %49, %50 : vector<8x128xf32>
    %52 = arith.mulf %51, %5 : vector<8x128xf32>
    %c1_i32_33 = arith.constant 1 : i32
    %c1_i32_34 = arith.constant 1 : i32
    %c1_i32_35 = arith.constant 1 : i32
    %c0_i32_36 = arith.constant 0 : i32
    %c0_i32_37 = arith.constant 0 : i32
    %53 = tpu.memref_slice %arg3[%c1_i32_33, %c0_i32_36, %c0_i32_37] : memref<13x128x128xbf16, #tpu.memory_space<any>> -> memref<1x128x128xbf16, #tpu.memory_space<any>>
    %54 = tpu.memref_squeeze %53 : memref<1x128x128xbf16, #tpu.memory_space<any>> -> memref<128x128xbf16, #tpu.memory_space<any>>
    %c0_i32_38 = arith.constant 0 : i32
    %c0_i32_39 = arith.constant 0 : i32
    %55 = tpu.memref_slice %arg5[%c1_i32_34, %c0_i32_38, %c0_i32_39] : memref<2x128x128xbf16, #tpu.memory_space<vmem>> -> memref<1x128x128xbf16, #tpu.memory_space<vmem>>
    %56 = tpu.memref_squeeze %55 : memref<1x128x128xbf16, #tpu.memory_space<vmem>> -> memref<128x128xbf16, #tpu.memory_space<vmem>>
    %57 = tpu.memref_slice %arg6[%c1_i32_35] : memref<2x!tpu.dma_semaphore, #tpu.memory_space<semaphore_mem>> -> memref<1x!tpu.dma_semaphore, #tpu.memory_space<semaphore_mem>>
    %58 = tpu.memref_squeeze %57 : memref<1x!tpu.dma_semaphore, #tpu.memory_space<semaphore_mem>> -> memref<!tpu.dma_semaphore, #tpu.memory_space<semaphore_mem>>
    tpu.wait_dma2 semaphore(%58 : memref<!tpu.dma_semaphore, #tpu.memory_space<semaphore_mem>>) src(%54 : memref<128x128xbf16, #tpu.memory_space<any>>) dst(%56 : memref<128x128xbf16, #tpu.memory_space<vmem>>)
    %c2_i32_40 = arith.constant 2 : i32
    %c0_i32_41 = arith.constant 0 : i32
    %c0_i32_42 = arith.constant 0 : i32
    %c0_i32_43 = arith.constant 0 : i32
    %c0_i32_44 = arith.constant 0 : i32
    %59 = tpu.memref_slice %arg3[%c2_i32_40, %c0_i32_43, %c0_i32_44] : memref<13x128x128xbf16, #tpu.memory_space<any>> -> memref<1x128x128xbf16, #tpu.memory_space<any>>
    %60 = tpu.memref_squeeze %59 : memref<1x128x128xbf16, #tpu.memory_space<any>> -> memref<128x128xbf16, #tpu.memory_space<any>>
    %c0_i32_45 = arith.constant 0 : i32
    %c0_i32_46 = arith.constant 0 : i32
    %61 = tpu.memref_slice %arg5[%c0_i32_41, %c0_i32_45, %c0_i32_46] : memref<2x128x128xbf16, #tpu.memory_space<vmem>> -> memref<1x128x128xbf16, #tpu.memory_space<vmem>>
    %62 = tpu.memref_squeeze %61 : memref<1x128x128xbf16, #tpu.memory_space<vmem>> -> memref<128x128xbf16, #tpu.memory_space<vmem>>
    %63 = tpu.memref_slice %arg6[%c0_i32_42] : memref<2x!tpu.dma_semaphore, #tpu.memory_space<semaphore_mem>> -> memref<1x!tpu.dma_semaphore, #tpu.memory_space<semaphore_mem>>
    %64 = tpu.memref_squeeze %63 : memref<1x!tpu.dma_semaphore, #tpu.memory_space<semaphore_mem>> -> memref<!tpu.dma_semaphore, #tpu.memory_space<semaphore_mem>>
    tpu.enqueue_dma source(%60 : memref<128x128xbf16, #tpu.memory_space<any>>) target(%62 : memref<128x128xbf16, #tpu.memory_space<vmem>>) target_semaphore(%64 : memref<!tpu.dma_semaphore, #tpu.memory_space<semaphore_mem>>)
    %65 = arith.truncf %52 : vector<8x128xf32> to vector<8x128xbf16>
    %c1 = arith.constant 1 : index
    %c0_47 = arith.constant 0 : index
    %c0_48 = arith.constant 0 : index
    %66 = vector.load %arg5[%c1, %c0_47, %c0_48] : memref<2x128x128xbf16, #tpu.memory_space<vmem>>, vector<1x128x128xbf16>
    %67 = vector.shape_cast %66 : vector<1x128x128xbf16> to vector<128x128xbf16>
    %cst_49 = arith.constant dense<0.000000e+00> : vector<8x128xf32>
    %68 = tpu.matmul %65, %67, %cst_49 {dimension_numbers = #tpu.dot_dimension_numbers<[1], [0], [0], [1], [0, 0, 1, 1], [], []>} : vector<8x128xbf16>, vector<128x128xbf16>, vector<8x128xf32> -> vector<8x128xf32>
    %c2_i32_50 = arith.constant 2 : i32
    %c0_i32_51 = arith.constant 0 : i32
    %c0_i32_52 = arith.constant 0 : i32
    %c0_i32_53 = arith.constant 0 : i32
    %c0_i32_54 = arith.constant 0 : i32
    %69 = tpu.memref_slice %arg3[%c2_i32_50, %c0_i32_53, %c0_i32_54] : memref<13x128x128xbf16, #tpu.memory_space<any>> -> memref<1x128x128xbf16, #tpu.memory_space<any>>
    %70 = tpu.memref_squeeze %69 : memref<1x128x128xbf16, #tpu.memory_space<any>> -> memref<128x128xbf16, #tpu.memory_space<any>>
    %c0_i32_55 = arith.constant 0 : i32
    %c0_i32_56 = arith.constant 0 : i32
    %71 = tpu.memref_slice %arg5[%c0_i32_51, %c0_i32_55, %c0_i32_56] : memref<2x128x128xbf16, #tpu.memory_space<vmem>> -> memref<1x128x128xbf16, #tpu.memory_space<vmem>>
    %72 = tpu.memref_squeeze %71 : memref<1x128x128xbf16, #tpu.memory_space<vmem>> -> memref<128x128xbf16, #tpu.memory_space<vmem>>
    %73 = tpu.memref_slice %arg6[%c0_i32_52] : memref<2x!tpu.dma_semaphore, #tpu.memory_space<semaphore_mem>> -> memref<1x!tpu.dma_semaphore, #tpu.memory_space<semaphore_mem>>
    %74 = tpu.memref_squeeze %73 : memref<1x!tpu.dma_semaphore, #tpu.memory_space<semaphore_mem>> -> memref<!tpu.dma_semaphore, #tpu.memory_space<semaphore_mem>>
    tpu.wait_dma2 semaphore(%74 : memref<!tpu.dma_semaphore, #tpu.memory_space<semaphore_mem>>) src(%70 : memref<128x128xbf16, #tpu.memory_space<any>>) dst(%72 : memref<128x128xbf16, #tpu.memory_space<vmem>>)
    %c3_i32 = arith.constant 3 : i32
    %c1_i32_57 = arith.constant 1 : i32
    %c1_i32_58 = arith.constant 1 : i32
    %c0_i32_59 = arith.constant 0 : i32
    %c0_i32_60 = arith.constant 0 : i32
    %75 = tpu.memref_slice %arg3[%c3_i32, %c0_i32_59, %c0_i32_60] : memref<13x128x128xbf16, #tpu.memory_space<any>> -> memref<1x128x128xbf16, #tpu.memory_space<any>>
    %76 = tpu.memref_squeeze %75 : memref<1x128x128xbf16, #tpu.memory_space<any>> -> memref<128x128xbf16, #tpu.memory_space<any>>
    %c0_i32_61 = arith.constant 0 : i32
    %c0_i32_62 = arith.constant 0 : i32
    %77 = tpu.memref_slice %arg5[%c1_i32_57, %c0_i32_61, %c0_i32_62] : memref<2x128x128xbf16, #tpu.memory_space<vmem>> -> memref<1x128x128xbf16, #tpu.memory_space<vmem>>
    %78 = tpu.memref_squeeze %77 : memref<1x128x128xbf16, #tpu.memory_space<vmem>> -> memref<128x128xbf16, #tpu.memory_space<vmem>>
    %79 = tpu.memref_slice %arg6[%c1_i32_58] : memref<2x!tpu.dma_semaphore, #tpu.memory_space<semaphore_mem>> -> memref<1x!tpu.dma_semaphore, #tpu.memory_space<semaphore_mem>>
    %80 = tpu.memref_squeeze %79 : memref<1x!tpu.dma_semaphore, #tpu.memory_space<semaphore_mem>> -> memref<!tpu.dma_semaphore, #tpu.memory_space<semaphore_mem>>
    tpu.enqueue_dma source(%76 : memref<128x128xbf16, #tpu.memory_space<any>>) target(%78 : memref<128x128xbf16, #tpu.memory_space<vmem>>) target_semaphore(%80 : memref<!tpu.dma_semaphore, #tpu.memory_space<semaphore_mem>>)
    %81 = arith.truncf %68 : vector<8x128xf32> to vector<8x128xbf16>
    %c0_63 = arith.constant 0 : index
    %c0_64 = arith.constant 0 : index
    %c0_65 = arith.constant 0 : index
    %82 = vector.load %arg5[%c0_63, %c0_64, %c0_65] : memref<2x128x128xbf16, #tpu.memory_space<vmem>>, vector<1x128x128xbf16>
    %83 = vector.shape_cast %82 : vector<1x128x128xbf16> to vector<128x128xbf16>
    %cst_66 = arith.constant dense<0.000000e+00> : vector<8x128xf32>
    %84 = tpu.matmul %81, %83, %cst_66 {dimension_numbers = #tpu.dot_dimension_numbers<[1], [0], [0], [1], [0, 0, 1, 1], [], []>} : vector<8x128xbf16>, vector<128x128xbf16>, vector<8x128xf32> -> vector<8x128xf32>
    %cst_67 = arith.constant dense<0.000000e+00> : vector<128xf32>
    %85 = vector.multi_reduction <add>, %84, %cst_67 [0] : vector<8x128xf32> to vector<128xf32>
    %86 = vector.shape_cast %85 : vector<128xf32> to vector<1x128xf32>
    %cst_68 = arith.constant 5.000000e-01 : f32
    %87 = vector.broadcast %cst_68 : f32 to vector<1x128xf32>
    %88 = arith.mulf %86, %87 : vector<1x128xf32>
    %89 = vector.broadcast %88 : vector<1x128xf32> to vector<8x128xf32>
    %90 = arith.subf %84, %89 : vector<8x128xf32>
    %91 = arith.mulf %90, %5 : vector<8x128xf32>
    %92 = arith.mulf %91, %91 : vector<8x128xf32>
    %cst_69 = arith.constant dense<0.000000e+00> : vector<128xf32>
    %93 = vector.multi_reduction <add>, %92, %cst_69 [0] : vector<8x128xf32> to vector<128xf32>
    %94 = vector.shape_cast %93 : vector<128xf32> to vector<1x128xf32>
    %cst_70 = arith.constant 5.000000e-01 : f32
    %95 = vector.broadcast %cst_70 : f32 to vector<1x128xf32>
    %96 = arith.mulf %94, %95 : vector<1x128xf32>
    %c1_71 = arith.constant 1 : index
    %c0_72 = arith.constant 0 : index
    %97 = vector.load %arg1[%c1_71, %c0_72] : memref<8x128xf32, #tpu.memory_space<vmem>>, vector<1x128xf32>
    %cst_73 = arith.constant 9.99999974E-6 : f32
    %98 = vector.broadcast %cst_73 : f32 to vector<1x128xf32>
    %99 = arith.addf %96, %98 : vector<1x128xf32>
    %100 = math.rsqrt %99 : vector<1x128xf32>
    %101 = arith.mulf %97, %100 : vector<1x128xf32>
    %102 = vector.broadcast %101 : vector<1x128xf32> to vector<8x128xf32>
    %103 = arith.mulf %91, %102 : vector<8x128xf32>
    %c1_74 = arith.constant 1 : index
    %c0_75 = arith.constant 0 : index
    %104 = vector.load %arg2[%c1_74, %c0_75] : memref<8x128xf32, #tpu.memory_space<vmem>>, vector<1x128xf32>
    %105 = vector.broadcast %104 : vector<1x128xf32> to vector<8x128xf32>
    %106 = arith.addf %103, %105 : vector<8x128xf32>
    %cst_76 = arith.constant 0.000000e+00 : f32
    %107 = vector.broadcast %cst_76 : f32 to vector<8x128xf32>
    %108 = arith.maximumf %106, %107 : vector<8x128xf32>
    %109 = arith.mulf %108, %5 : vector<8x128xf32>
    %c3_i32_77 = arith.constant 3 : i32
    %c1_i32_78 = arith.constant 1 : i32
    %c1_i32_79 = arith.constant 1 : i32
    %c0_i32_80 = arith.constant 0 : i32
    %c0_i32_81 = arith.constant 0 : i32
    %110 = tpu.memref_slice %arg3[%c3_i32_77, %c0_i32_80, %c0_i32_81] : memref<13x128x128xbf16, #tpu.memory_space<any>> -> memref<1x128x128xbf16, #tpu.memory_space<any>>
    %111 = tpu.memref_squeeze %110 : memref<1x128x128xbf16, #tpu.memory_space<any>> -> memref<128x128xbf16, #tpu.memory_space<any>>
    %c0_i32_82 = arith.constant 0 : i32
    %c0_i32_83 = arith.constant 0 : i32
    %112 = tpu.memref_slice %arg5[%c1_i32_78, %c0_i32_82, %c0_i32_83] : memref<2x128x128xbf16, #tpu.memory_space<vmem>> -> memref<1x128x128xbf16, #tpu.memory_space<vmem>>
    %113 = tpu.memref_squeeze %112 : memref<1x128x128xbf16, #tpu.memory_space<vmem>> -> memref<128x128xbf16, #tpu.memory_space<vmem>>
    %114 = tpu.memref_slice %arg6[%c1_i32_79] : memref<2x!tpu.dma_semaphore, #tpu.memory_space<semaphore_mem>> -> memref<1x!tpu.dma_semaphore, #tpu.memory_space<semaphore_mem>>
    %115 = tpu.memref_squeeze %114 : memref<1x!tpu.dma_semaphore, #tpu.memory_space<semaphore_mem>> -> memref<!tpu.dma_semaphore, #tpu.memory_space<semaphore_mem>>
    tpu.wait_dma2 semaphore(%115 : memref<!tpu.dma_semaphore, #tpu.memory_space<semaphore_mem>>) src(%111 : memref<128x128xbf16, #tpu.memory_space<any>>) dst(%113 : memref<128x128xbf16, #tpu.memory_space<vmem>>)
    %c4_i32 = arith.constant 4 : i32
    %c0_i32_84 = arith.constant 0 : i32
    %c0_i32_85 = arith.constant 0 : i32
    %c0_i32_86 = arith.constant 0 : i32
    %c0_i32_87 = arith.constant 0 : i32
    %116 = tpu.memref_slice %arg3[%c4_i32, %c0_i32_86, %c0_i32_87] : memref<13x128x128xbf16, #tpu.memory_space<any>> -> memref<1x128x128xbf16, #tpu.memory_space<any>>
    %117 = tpu.memref_squeeze %116 : memref<1x128x128xbf16, #tpu.memory_space<any>> -> memref<128x128xbf16, #tpu.memory_space<any>>
    %c0_i32_88 = arith.constant 0 : i32
    %c0_i32_89 = arith.constant 0 : i32
    %118 = tpu.memref_slice %arg5[%c0_i32_84, %c0_i32_88, %c0_i32_89] : memref<2x128x128xbf16, #tpu.memory_space<vmem>> -> memref<1x128x128xbf16, #tpu.memory_space<vmem>>
    %119 = tpu.memref_squeeze %118 : memref<1x128x128xbf16, #tpu.memory_space<vmem>> -> memref<128x128xbf16, #tpu.memory_space<vmem>>
    %120 = tpu.memref_slice %arg6[%c0_i32_85] : memref<2x!tpu.dma_semaphore, #tpu.memory_space<semaphore_mem>> -> memref<1x!tpu.dma_semaphore, #tpu.memory_space<semaphore_mem>>
    %121 = tpu.memref_squeeze %120 : memref<1x!tpu.dma_semaphore, #tpu.memory_space<semaphore_mem>> -> memref<!tpu.dma_semaphore, #tpu.memory_space<semaphore_mem>>
    tpu.enqueue_dma source(%117 : memref<128x128xbf16, #tpu.memory_space<any>>) target(%119 : memref<128x128xbf16, #tpu.memory_space<vmem>>) target_semaphore(%121 : memref<!tpu.dma_semaphore, #tpu.memory_space<semaphore_mem>>)
    %122 = arith.truncf %109 : vector<8x128xf32> to vector<8x128xbf16>
    %c1_90 = arith.constant 1 : index
    %c0_91 = arith.constant 0 : index
    %c0_92 = arith.constant 0 : index
    %123 = vector.load %arg5[%c1_90, %c0_91, %c0_92] : memref<2x128x128xbf16, #tpu.memory_space<vmem>>, vector<1x128x128xbf16>
    %124 = vector.shape_cast %123 : vector<1x128x128xbf16> to vector<128x128xbf16>
    %cst_93 = arith.constant dense<0.000000e+00> : vector<8x128xf32>
    %125 = tpu.matmul %122, %124, %cst_93 {dimension_numbers = #tpu.dot_dimension_numbers<[1], [0], [0], [1], [0, 0, 1, 1], [], []>} : vector<8x128xbf16>, vector<128x128xbf16>, vector<8x128xf32> -> vector<8x128xf32>
    %c4_i32_94 = arith.constant 4 : i32
    %c0_i32_95 = arith.constant 0 : i32
    %c0_i32_96 = arith.constant 0 : i32
    %c0_i32_97 = arith.constant 0 : i32
    %c0_i32_98 = arith.constant 0 : i32
    %126 = tpu.memref_slice %arg3[%c4_i32_94, %c0_i32_97, %c0_i32_98] : memref<13x128x128xbf16, #tpu.memory_space<any>> -> memref<1x128x128xbf16, #tpu.memory_space<any>>
    %127 = tpu.memref_squeeze %126 : memref<1x128x128xbf16, #tpu.memory_space<any>> -> memref<128x128xbf16, #tpu.memory_space<any>>
    %c0_i32_99 = arith.constant 0 : i32
    %c0_i32_100 = arith.constant 0 : i32
    %128 = tpu.memref_slice %arg5[%c0_i32_95, %c0_i32_99, %c0_i32_100] : memref<2x128x128xbf16, #tpu.memory_space<vmem>> -> memref<1x128x128xbf16, #tpu.memory_space<vmem>>
    %129 = tpu.memref_squeeze %128 : memref<1x128x128xbf16, #tpu.memory_space<vmem>> -> memref<128x128xbf16, #tpu.memory_space<vmem>>
    %130 = tpu.memref_slice %arg6[%c0_i32_96] : memref<2x!tpu.dma_semaphore, #tpu.memory_space<semaphore_mem>> -> memref<1x!tpu.dma_semaphore, #tpu.memory_space<semaphore_mem>>
    %131 = tpu.memref_squeeze %130 : memref<1x!tpu.dma_semaphore, #tpu.memory_space<semaphore_mem>> -> memref<!tpu.dma_semaphore, #tpu.memory_space<semaphore_mem>>
    tpu.wait_dma2 semaphore(%131 : memref<!tpu.dma_semaphore, #tpu.memory_space<semaphore_mem>>) src(%127 : memref<128x128xbf16, #tpu.memory_space<any>>) dst(%129 : memref<128x128xbf16, #tpu.memory_space<vmem>>)
    %c5_i32 = arith.constant 5 : i32
    %c1_i32_101 = arith.constant 1 : i32
    %c1_i32_102 = arith.constant 1 : i32
    %c0_i32_103 = arith.constant 0 : i32
    %c0_i32_104 = arith.constant 0 : i32
    %132 = tpu.memref_slice %arg3[%c5_i32, %c0_i32_103, %c0_i32_104] : memref<13x128x128xbf16, #tpu.memory_space<any>> -> memref<1x128x128xbf16, #tpu.memory_space<any>>
    %133 = tpu.memref_squeeze %132 : memref<1x128x128xbf16, #tpu.memory_space<any>> -> memref<128x128xbf16, #tpu.memory_space<any>>
    %c0_i32_105 = arith.constant 0 : i32
    %c0_i32_106 = arith.constant 0 : i32
    %134 = tpu.memref_slice %arg5[%c1_i32_101, %c0_i32_105, %c0_i32_106] : memref<2x128x128xbf16, #tpu.memory_space<vmem>> -> memref<1x128x128xbf16, #tpu.memory_space<vmem>>
    %135 = tpu.memref_squeeze %134 : memref<1x128x128xbf16, #tpu.memory_space<vmem>> -> memref<128x128xbf16, #tpu.memory_space<vmem>>
    %136 = tpu.memref_slice %arg6[%c1_i32_102] : memref<2x!tpu.dma_semaphore, #tpu.memory_space<semaphore_mem>> -> memref<1x!tpu.dma_semaphore, #tpu.memory_space<semaphore_mem>>
    %137 = tpu.memref_squeeze %136 : memref<1x!tpu.dma_semaphore, #tpu.memory_space<semaphore_mem>> -> memref<!tpu.dma_semaphore, #tpu.memory_space<semaphore_mem>>
    tpu.enqueue_dma source(%133 : memref<128x128xbf16, #tpu.memory_space<any>>) target(%135 : memref<128x128xbf16, #tpu.memory_space<vmem>>) target_semaphore(%137 : memref<!tpu.dma_semaphore, #tpu.memory_space<semaphore_mem>>)
    %138 = arith.truncf %125 : vector<8x128xf32> to vector<8x128xbf16>
    %c0_107 = arith.constant 0 : index
    %c0_108 = arith.constant 0 : index
    %c0_109 = arith.constant 0 : index
    %139 = vector.load %arg5[%c0_107, %c0_108, %c0_109] : memref<2x128x128xbf16, #tpu.memory_space<vmem>>, vector<1x128x128xbf16>
    %140 = vector.shape_cast %139 : vector<1x128x128xbf16> to vector<128x128xbf16>
    %cst_110 = arith.constant dense<0.000000e+00> : vector<8x128xf32>
    %141 = tpu.matmul %138, %140, %cst_110 {dimension_numbers = #tpu.dot_dimension_numbers<[1], [0], [0], [1], [0, 0, 1, 1], [], []>} : vector<8x128xbf16>, vector<128x128xbf16>, vector<8x128xf32> -> vector<8x128xf32>
    %cst_111 = arith.constant dense<0.000000e+00> : vector<128xf32>
    %142 = vector.multi_reduction <add>, %141, %cst_111 [0] : vector<8x128xf32> to vector<128xf32>
    %143 = vector.shape_cast %142 : vector<128xf32> to vector<1x128xf32>
    %cst_112 = arith.constant 5.000000e-01 : f32
    %144 = vector.broadcast %cst_112 : f32 to vector<1x128xf32>
    %145 = arith.mulf %143, %144 : vector<1x128xf32>
    %146 = vector.broadcast %145 : vector<1x128xf32> to vector<8x128xf32>
    %147 = arith.subf %141, %146 : vector<8x128xf32>
    %148 = arith.mulf %147, %5 : vector<8x128xf32>
    %149 = arith.mulf %148, %148 : vector<8x128xf32>
    %cst_113 = arith.constant dense<0.000000e+00> : vector<128xf32>
    %150 = vector.multi_reduction <add>, %149, %cst_113 [0] : vector<8x128xf32> to vector<128xf32>
    %151 = vector.shape_cast %150 : vector<128xf32> to vector<1x128xf32>
    %cst_114 = arith.constant 5.000000e-01 : f32
    %152 = vector.broadcast %cst_114 : f32 to vector<1x128xf32>
    %153 = arith.mulf %151, %152 : vector<1x128xf32>
    %c2 = arith.constant 2 : index
    %c0_115 = arith.constant 0 : index
    %154 = vector.load %arg1[%c2, %c0_115] : memref<8x128xf32, #tpu.memory_space<vmem>>, vector<1x128xf32>
    %cst_116 = arith.constant 9.99999974E-6 : f32
    %155 = vector.broadcast %cst_116 : f32 to vector<1x128xf32>
    %156 = arith.addf %153, %155 : vector<1x128xf32>
    %157 = math.rsqrt %156 : vector<1x128xf32>
    %158 = arith.mulf %154, %157 : vector<1x128xf32>
    %159 = vector.broadcast %158 : vector<1x128xf32> to vector<8x128xf32>
    %160 = arith.mulf %148, %159 : vector<8x128xf32>
    %c2_117 = arith.constant 2 : index
    %c0_118 = arith.constant 0 : index
    %161 = vector.load %arg2[%c2_117, %c0_118] : memref<8x128xf32, #tpu.memory_space<vmem>>, vector<1x128xf32>
    %162 = vector.broadcast %161 : vector<1x128xf32> to vector<8x128xf32>
    %163 = arith.addf %160, %162 : vector<8x128xf32>
    %cst_119 = arith.constant 0.000000e+00 : f32
    %164 = vector.broadcast %cst_119 : f32 to vector<8x128xf32>
    %165 = arith.maximumf %163, %164 : vector<8x128xf32>
    %166 = arith.mulf %165, %5 : vector<8x128xf32>
    %c5_i32_120 = arith.constant 5 : i32
    %c1_i32_121 = arith.constant 1 : i32
    %c1_i32_122 = arith.constant 1 : i32
    %c0_i32_123 = arith.constant 0 : i32
    %c0_i32_124 = arith.constant 0 : i32
    %167 = tpu.memref_slice %arg3[%c5_i32_120, %c0_i32_123, %c0_i32_124] : memref<13x128x128xbf16, #tpu.memory_space<any>> -> memref<1x128x128xbf16, #tpu.memory_space<any>>
    %168 = tpu.memref_squeeze %167 : memref<1x128x128xbf16, #tpu.memory_space<any>> -> memref<128x128xbf16, #tpu.memory_space<any>>
    %c0_i32_125 = arith.constant 0 : i32
    %c0_i32_126 = arith.constant 0 : i32
    %169 = tpu.memref_slice %arg5[%c1_i32_121, %c0_i32_125, %c0_i32_126] : memref<2x128x128xbf16, #tpu.memory_space<vmem>> -> memref<1x128x128xbf16, #tpu.memory_space<vmem>>
    %170 = tpu.memref_squeeze %169 : memref<1x128x128xbf16, #tpu.memory_space<vmem>> -> memref<128x128xbf16, #tpu.memory_space<vmem>>
    %171 = tpu.memref_slice %arg6[%c1_i32_122] : memref<2x!tpu.dma_semaphore, #tpu.memory_space<semaphore_mem>> -> memref<1x!tpu.dma_semaphore, #tpu.memory_space<semaphore_mem>>
    %172 = tpu.memref_squeeze %171 : memref<1x!tpu.dma_semaphore, #tpu.memory_space<semaphore_mem>> -> memref<!tpu.dma_semaphore, #tpu.memory_space<semaphore_mem>>
    tpu.wait_dma2 semaphore(%172 : memref<!tpu.dma_semaphore, #tpu.memory_space<semaphore_mem>>) src(%168 : memref<128x128xbf16, #tpu.memory_space<any>>) dst(%170 : memref<128x128xbf16, #tpu.memory_space<vmem>>)
    %c6_i32 = arith.constant 6 : i32
    %c0_i32_127 = arith.constant 0 : i32
    %c0_i32_128 = arith.constant 0 : i32
    %c0_i32_129 = arith.constant 0 : i32
    %c0_i32_130 = arith.constant 0 : i32
    %173 = tpu.memref_slice %arg3[%c6_i32, %c0_i32_129, %c0_i32_130] : memref<13x128x128xbf16, #tpu.memory_space<any>> -> memref<1x128x128xbf16, #tpu.memory_space<any>>
    %174 = tpu.memref_squeeze %173 : memref<1x128x128xbf16, #tpu.memory_space<any>> -> memref<128x128xbf16, #tpu.memory_space<any>>
    %c0_i32_131 = arith.constant 0 : i32
    %c0_i32_132 = arith.constant 0 : i32
    %175 = tpu.memref_slice %arg5[%c0_i32_127, %c0_i32_131, %c0_i32_132] : memref<2x128x128xbf16, #tpu.memory_space<vmem>> -> memref<1x128x128xbf16, #tpu.memory_space<vmem>>
    %176 = tpu.memref_squeeze %175 : memref<1x128x128xbf16, #tpu.memory_space<vmem>> -> memref<128x128xbf16, #tpu.memory_space<vmem>>
    %177 = tpu.memref_slice %arg6[%c0_i32_128] : memref<2x!tpu.dma_semaphore, #tpu.memory_space<semaphore_mem>> -> memref<1x!tpu.dma_semaphore, #tpu.memory_space<semaphore_mem>>
    %178 = tpu.memref_squeeze %177 : memref<1x!tpu.dma_semaphore, #tpu.memory_space<semaphore_mem>> -> memref<!tpu.dma_semaphore, #tpu.memory_space<semaphore_mem>>
    tpu.enqueue_dma source(%174 : memref<128x128xbf16, #tpu.memory_space<any>>) target(%176 : memref<128x128xbf16, #tpu.memory_space<vmem>>) target_semaphore(%178 : memref<!tpu.dma_semaphore, #tpu.memory_space<semaphore_mem>>)
    %179 = arith.truncf %166 : vector<8x128xf32> to vector<8x128xbf16>
    %c1_133 = arith.constant 1 : index
    %c0_134 = arith.constant 0 : index
    %c0_135 = arith.constant 0 : index
    %180 = vector.load %arg5[%c1_133, %c0_134, %c0_135] : memref<2x128x128xbf16, #tpu.memory_space<vmem>>, vector<1x128x128xbf16>
    %181 = vector.shape_cast %180 : vector<1x128x128xbf16> to vector<128x128xbf16>
    %cst_136 = arith.constant dense<0.000000e+00> : vector<8x128xf32>
    %182 = tpu.matmul %179, %181, %cst_136 {dimension_numbers = #tpu.dot_dimension_numbers<[1], [0], [0], [1], [0, 0, 1, 1], [], []>} : vector<8x128xbf16>, vector<128x128xbf16>, vector<8x128xf32> -> vector<8x128xf32>
    %c6_i32_137 = arith.constant 6 : i32
    %c0_i32_138 = arith.constant 0 : i32
    %c0_i32_139 = arith.constant 0 : i32
    %c0_i32_140 = arith.constant 0 : i32
    %c0_i32_141 = arith.constant 0 : i32
    %183 = tpu.memref_slice %arg3[%c6_i32_137, %c0_i32_140, %c0_i32_141] : memref<13x128x128xbf16, #tpu.memory_space<any>> -> memref<1x128x128xbf16, #tpu.memory_space<any>>
    %184 = tpu.memref_squeeze %183 : memref<1x128x128xbf16, #tpu.memory_space<any>> -> memref<128x128xbf16, #tpu.memory_space<any>>
    %c0_i32_142 = arith.constant 0 : i32
    %c0_i32_143 = arith.constant 0 : i32
    %185 = tpu.memref_slice %arg5[%c0_i32_138, %c0_i32_142, %c0_i32_143] : memref<2x128x128xbf16, #tpu.memory_space<vmem>> -> memref<1x128x128xbf16, #tpu.memory_space<vmem>>
    %186 = tpu.memref_squeeze %185 : memref<1x128x128xbf16, #tpu.memory_space<vmem>> -> memref<128x128xbf16, #tpu.memory_space<vmem>>
    %187 = tpu.memref_slice %arg6[%c0_i32_139] : memref<2x!tpu.dma_semaphore, #tpu.memory_space<semaphore_mem>> -> memref<1x!tpu.dma_semaphore, #tpu.memory_space<semaphore_mem>>
    %188 = tpu.memref_squeeze %187 : memref<1x!tpu.dma_semaphore, #tpu.memory_space<semaphore_mem>> -> memref<!tpu.dma_semaphore, #tpu.memory_space<semaphore_mem>>
    tpu.wait_dma2 semaphore(%188 : memref<!tpu.dma_semaphore, #tpu.memory_space<semaphore_mem>>) src(%184 : memref<128x128xbf16, #tpu.memory_space<any>>) dst(%186 : memref<128x128xbf16, #tpu.memory_space<vmem>>)
    %c7_i32 = arith.constant 7 : i32
    %c1_i32_144 = arith.constant 1 : i32
    %c1_i32_145 = arith.constant 1 : i32
    %c0_i32_146 = arith.constant 0 : i32
    %c0_i32_147 = arith.constant 0 : i32
    %189 = tpu.memref_slice %arg3[%c7_i32, %c0_i32_146, %c0_i32_147] : memref<13x128x128xbf16, #tpu.memory_space<any>> -> memref<1x128x128xbf16, #tpu.memory_space<any>>
    %190 = tpu.memref_squeeze %189 : memref<1x128x128xbf16, #tpu.memory_space<any>> -> memref<128x128xbf16, #tpu.memory_space<any>>
    %c0_i32_148 = arith.constant 0 : i32
    %c0_i32_149 = arith.constant 0 : i32
    %191 = tpu.memref_slice %arg5[%c1_i32_144, %c0_i32_148, %c0_i32_149] : memref<2x128x128xbf16, #tpu.memory_space<vmem>> -> memref<1x128x128xbf16, #tpu.memory_space<vmem>>
    %192 = tpu.memref_squeeze %191 : memref<1x128x128xbf16, #tpu.memory_space<vmem>> -> memref<128x128xbf16, #tpu.memory_space<vmem>>
    %193 = tpu.memref_slice %arg6[%c1_i32_145] : memref<2x!tpu.dma_semaphore, #tpu.memory_space<semaphore_mem>> -> memref<1x!tpu.dma_semaphore, #tpu.memory_space<semaphore_mem>>
    %194 = tpu.memref_squeeze %193 : memref<1x!tpu.dma_semaphore, #tpu.memory_space<semaphore_mem>> -> memref<!tpu.dma_semaphore, #tpu.memory_space<semaphore_mem>>
    tpu.enqueue_dma source(%190 : memref<128x128xbf16, #tpu.memory_space<any>>) target(%192 : memref<128x128xbf16, #tpu.memory_space<vmem>>) target_semaphore(%194 : memref<!tpu.dma_semaphore, #tpu.memory_space<semaphore_mem>>)
    %195 = arith.truncf %182 : vector<8x128xf32> to vector<8x128xbf16>
    %c0_150 = arith.constant 0 : index
    %c0_151 = arith.constant 0 : index
    %c0_152 = arith.constant 0 : index
    %196 = vector.load %arg5[%c0_150, %c0_151, %c0_152] : memref<2x128x128xbf16, #tpu.memory_space<vmem>>, vector<1x128x128xbf16>
    %197 = vector.shape_cast %196 : vector<1x128x128xbf16> to vector<128x128xbf16>
    %cst_153 = arith.constant dense<0.000000e+00> : vector<8x128xf32>
    %198 = tpu.matmul %195, %197, %cst_153 {dimension_numbers = #tpu.dot_dimension_numbers<[1], [0], [0], [1], [0, 0, 1, 1], [], []>} : vector<8x128xbf16>, vector<128x128xbf16>, vector<8x128xf32> -> vector<8x128xf32>
    %cst_154 = arith.constant dense<0.000000e+00> : vector<128xf32>
    %199 = vector.multi_reduction <add>, %198, %cst_154 [0] : vector<8x128xf32> to vector<128xf32>
    %200 = vector.shape_cast %199 : vector<128xf32> to vector<1x128xf32>
    %cst_155 = arith.constant 5.000000e-01 : f32
    %201 = vector.broadcast %cst_155 : f32 to vector<1x128xf32>
    %202 = arith.mulf %200, %201 : vector<1x128xf32>
    %203 = vector.broadcast %202 : vector<1x128xf32> to vector<8x128xf32>
    %204 = arith.subf %198, %203 : vector<8x128xf32>
    %205 = arith.mulf %204, %5 : vector<8x128xf32>
    %206 = arith.mulf %205, %205 : vector<8x128xf32>
    %cst_156 = arith.constant dense<0.000000e+00> : vector<128xf32>
    %207 = vector.multi_reduction <add>, %206, %cst_156 [0] : vector<8x128xf32> to vector<128xf32>
    %208 = vector.shape_cast %207 : vector<128xf32> to vector<1x128xf32>
    %cst_157 = arith.constant 5.000000e-01 : f32
    %209 = vector.broadcast %cst_157 : f32 to vector<1x128xf32>
    %210 = arith.mulf %208, %209 : vector<1x128xf32>
    %c3 = arith.constant 3 : index
    %c0_158 = arith.constant 0 : index
    %211 = vector.load %arg1[%c3, %c0_158] : memref<8x128xf32, #tpu.memory_space<vmem>>, vector<1x128xf32>
    %cst_159 = arith.constant 9.99999974E-6 : f32
    %212 = vector.broadcast %cst_159 : f32 to vector<1x128xf32>
    %213 = arith.addf %210, %212 : vector<1x128xf32>
    %214 = math.rsqrt %213 : vector<1x128xf32>
    %215 = arith.mulf %211, %214 : vector<1x128xf32>
    %216 = vector.broadcast %215 : vector<1x128xf32> to vector<8x128xf32>
    %217 = arith.mulf %205, %216 : vector<8x128xf32>
    %c3_160 = arith.constant 3 : index
    %c0_161 = arith.constant 0 : index
    %218 = vector.load %arg2[%c3_160, %c0_161] : memref<8x128xf32, #tpu.memory_space<vmem>>, vector<1x128xf32>
    %219 = vector.broadcast %218 : vector<1x128xf32> to vector<8x128xf32>
    %220 = arith.addf %217, %219 : vector<8x128xf32>
    %cst_162 = arith.constant 0.000000e+00 : f32
    %221 = vector.broadcast %cst_162 : f32 to vector<8x128xf32>
    %222 = arith.maximumf %220, %221 : vector<8x128xf32>
    %223 = arith.mulf %222, %5 : vector<8x128xf32>
    %c7_i32_163 = arith.constant 7 : i32
    %c1_i32_164 = arith.constant 1 : i32
    %c1_i32_165 = arith.constant 1 : i32
    %c0_i32_166 = arith.constant 0 : i32
    %c0_i32_167 = arith.constant 0 : i32
    %224 = tpu.memref_slice %arg3[%c7_i32_163, %c0_i32_166, %c0_i32_167] : memref<13x128x128xbf16, #tpu.memory_space<any>> -> memref<1x128x128xbf16, #tpu.memory_space<any>>
    %225 = tpu.memref_squeeze %224 : memref<1x128x128xbf16, #tpu.memory_space<any>> -> memref<128x128xbf16, #tpu.memory_space<any>>
    %c0_i32_168 = arith.constant 0 : i32
    %c0_i32_169 = arith.constant 0 : i32
    %226 = tpu.memref_slice %arg5[%c1_i32_164, %c0_i32_168, %c0_i32_169] : memref<2x128x128xbf16, #tpu.memory_space<vmem>> -> memref<1x128x128xbf16, #tpu.memory_space<vmem>>
    %227 = tpu.memref_squeeze %226 : memref<1x128x128xbf16, #tpu.memory_space<vmem>> -> memref<128x128xbf16, #tpu.memory_space<vmem>>
    %228 = tpu.memref_slice %arg6[%c1_i32_165] : memref<2x!tpu.dma_semaphore, #tpu.memory_space<semaphore_mem>> -> memref<1x!tpu.dma_semaphore, #tpu.memory_space<semaphore_mem>>
    %229 = tpu.memref_squeeze %228 : memref<1x!tpu.dma_semaphore, #tpu.memory_space<semaphore_mem>> -> memref<!tpu.dma_semaphore, #tpu.memory_space<semaphore_mem>>
    tpu.wait_dma2 semaphore(%229 : memref<!tpu.dma_semaphore, #tpu.memory_space<semaphore_mem>>) src(%225 : memref<128x128xbf16, #tpu.memory_space<any>>) dst(%227 : memref<128x128xbf16, #tpu.memory_space<vmem>>)
    %c8_i32 = arith.constant 8 : i32
    %c0_i32_170 = arith.constant 0 : i32
    %c0_i32_171 = arith.constant 0 : i32
    %c0_i32_172 = arith.constant 0 : i32
    %c0_i32_173 = arith.constant 0 : i32
    %230 = tpu.memref_slice %arg3[%c8_i32, %c0_i32_172, %c0_i32_173] : memref<13x128x128xbf16, #tpu.memory_space<any>> -> memref<1x128x128xbf16, #tpu.memory_space<any>>
    %231 = tpu.memref_squeeze %230 : memref<1x128x128xbf16, #tpu.memory_space<any>> -> memref<128x128xbf16, #tpu.memory_space<any>>
    %c0_i32_174 = arith.constant 0 : i32
    %c0_i32_175 = arith.constant 0 : i32
    %232 = tpu.memref_slice %arg5[%c0_i32_170, %c0_i32_174, %c0_i32_175] : memref<2x128x128xbf16, #tpu.memory_space<vmem>> -> memref<1x128x128xbf16, #tpu.memory_space<vmem>>
    %233 = tpu.memref_squeeze %232 : memref<1x128x128xbf16, #tpu.memory_space<vmem>> -> memref<128x128xbf16, #tpu.memory_space<vmem>>
    %234 = tpu.memref_slice %arg6[%c0_i32_171] : memref<2x!tpu.dma_semaphore, #tpu.memory_space<semaphore_mem>> -> memref<1x!tpu.dma_semaphore, #tpu.memory_space<semaphore_mem>>
    %235 = tpu.memref_squeeze %234 : memref<1x!tpu.dma_semaphore, #tpu.memory_space<semaphore_mem>> -> memref<!tpu.dma_semaphore, #tpu.memory_space<semaphore_mem>>
    tpu.enqueue_dma source(%231 : memref<128x128xbf16, #tpu.memory_space<any>>) target(%233 : memref<128x128xbf16, #tpu.memory_space<vmem>>) target_semaphore(%235 : memref<!tpu.dma_semaphore, #tpu.memory_space<semaphore_mem>>)
    %236 = arith.truncf %223 : vector<8x128xf32> to vector<8x128xbf16>
    %c1_176 = arith.constant 1 : index
    %c0_177 = arith.constant 0 : index
    %c0_178 = arith.constant 0 : index
    %237 = vector.load %arg5[%c1_176, %c0_177, %c0_178] : memref<2x128x128xbf16, #tpu.memory_space<vmem>>, vector<1x128x128xbf16>
    %238 = vector.shape_cast %237 : vector<1x128x128xbf16> to vector<128x128xbf16>
    %cst_179 = arith.constant dense<0.000000e+00> : vector<8x128xf32>
    %239 = tpu.matmul %236, %238, %cst_179 {dimension_numbers = #tpu.dot_dimension_numbers<[1], [0], [0], [1], [0, 0, 1, 1], [], []>} : vector<8x128xbf16>, vector<128x128xbf16>, vector<8x128xf32> -> vector<8x128xf32>
    %c8_i32_180 = arith.constant 8 : i32
    %c0_i32_181 = arith.constant 0 : i32
    %c0_i32_182 = arith.constant 0 : i32
    %c0_i32_183 = arith.constant 0 : i32
    %c0_i32_184 = arith.constant 0 : i32
    %240 = tpu.memref_slice %arg3[%c8_i32_180, %c0_i32_183, %c0_i32_184] : memref<13x128x128xbf16, #tpu.memory_space<any>> -> memref<1x128x128xbf16, #tpu.memory_space<any>>
    %241 = tpu.memref_squeeze %240 : memref<1x128x128xbf16, #tpu.memory_space<any>> -> memref<128x128xbf16, #tpu.memory_space<any>>
    %c0_i32_185 = arith.constant 0 : i32
    %c0_i32_186 = arith.constant 0 : i32
    %242 = tpu.memref_slice %arg5[%c0_i32_181, %c0_i32_185, %c0_i32_186] : memref<2x128x128xbf16, #tpu.memory_space<vmem>> -> memref<1x128x128xbf16, #tpu.memory_space<vmem>>
    %243 = tpu.memref_squeeze %242 : memref<1x128x128xbf16, #tpu.memory_space<vmem>> -> memref<128x128xbf16, #tpu.memory_space<vmem>>
    %244 = tpu.memref_slice %arg6[%c0_i32_182] : memref<2x!tpu.dma_semaphore, #tpu.memory_space<semaphore_mem>> -> memref<1x!tpu.dma_semaphore, #tpu.memory_space<semaphore_mem>>
    %245 = tpu.memref_squeeze %244 : memref<1x!tpu.dma_semaphore, #tpu.memory_space<semaphore_mem>> -> memref<!tpu.dma_semaphore, #tpu.memory_space<semaphore_mem>>
    tpu.wait_dma2 semaphore(%245 : memref<!tpu.dma_semaphore, #tpu.memory_space<semaphore_mem>>) src(%241 : memref<128x128xbf16, #tpu.memory_space<any>>) dst(%243 : memref<128x128xbf16, #tpu.memory_space<vmem>>)
    %c9_i32 = arith.constant 9 : i32
    %c1_i32_187 = arith.constant 1 : i32
    %c1_i32_188 = arith.constant 1 : i32
    %c0_i32_189 = arith.constant 0 : i32
    %c0_i32_190 = arith.constant 0 : i32
    %246 = tpu.memref_slice %arg3[%c9_i32, %c0_i32_189, %c0_i32_190] : memref<13x128x128xbf16, #tpu.memory_space<any>> -> memref<1x128x128xbf16, #tpu.memory_space<any>>
    %247 = tpu.memref_squeeze %246 : memref<1x128x128xbf16, #tpu.memory_space<any>> -> memref<128x128xbf16, #tpu.memory_space<any>>
    %c0_i32_191 = arith.constant 0 : i32
    %c0_i32_192 = arith.constant 0 : i32
    %248 = tpu.memref_slice %arg5[%c1_i32_187, %c0_i32_191, %c0_i32_192] : memref<2x128x128xbf16, #tpu.memory_space<vmem>> -> memref<1x128x128xbf16, #tpu.memory_space<vmem>>
    %249 = tpu.memref_squeeze %248 : memref<1x128x128xbf16, #tpu.memory_space<vmem>> -> memref<128x128xbf16, #tpu.memory_space<vmem>>
    %250 = tpu.memref_slice %arg6[%c1_i32_188] : memref<2x!tpu.dma_semaphore, #tpu.memory_space<semaphore_mem>> -> memref<1x!tpu.dma_semaphore, #tpu.memory_space<semaphore_mem>>
    %251 = tpu.memref_squeeze %250 : memref<1x!tpu.dma_semaphore, #tpu.memory_space<semaphore_mem>> -> memref<!tpu.dma_semaphore, #tpu.memory_space<semaphore_mem>>
    tpu.enqueue_dma source(%247 : memref<128x128xbf16, #tpu.memory_space<any>>) target(%249 : memref<128x128xbf16, #tpu.memory_space<vmem>>) target_semaphore(%251 : memref<!tpu.dma_semaphore, #tpu.memory_space<semaphore_mem>>)
    %252 = arith.truncf %239 : vector<8x128xf32> to vector<8x128xbf16>
    %c0_193 = arith.constant 0 : index
    %c0_194 = arith.constant 0 : index
    %c0_195 = arith.constant 0 : index
    %253 = vector.load %arg5[%c0_193, %c0_194, %c0_195] : memref<2x128x128xbf16, #tpu.memory_space<vmem>>, vector<1x128x128xbf16>
    %254 = vector.shape_cast %253 : vector<1x128x128xbf16> to vector<128x128xbf16>
    %cst_196 = arith.constant dense<0.000000e+00> : vector<8x128xf32>
    %255 = tpu.matmul %252, %254, %cst_196 {dimension_numbers = #tpu.dot_dimension_numbers<[1], [0], [0], [1], [0, 0, 1, 1], [], []>} : vector<8x128xbf16>, vector<128x128xbf16>, vector<8x128xf32> -> vector<8x128xf32>
    %cst_197 = arith.constant dense<0.000000e+00> : vector<128xf32>
    %256 = vector.multi_reduction <add>, %255, %cst_197 [0] : vector<8x128xf32> to vector<128xf32>
    %257 = vector.shape_cast %256 : vector<128xf32> to vector<1x128xf32>
    %cst_198 = arith.constant 5.000000e-01 : f32
    %258 = vector.broadcast %cst_198 : f32 to vector<1x128xf32>
    %259 = arith.mulf %257, %258 : vector<1x128xf32>
    %260 = vector.broadcast %259 : vector<1x128xf32> to vector<8x128xf32>
    %261 = arith.subf %255, %260 : vector<8x128xf32>
    %262 = arith.mulf %261, %5 : vector<8x128xf32>
    %263 = arith.mulf %262, %262 : vector<8x128xf32>
    %cst_199 = arith.constant dense<0.000000e+00> : vector<128xf32>
    %264 = vector.multi_reduction <add>, %263, %cst_199 [0] : vector<8x128xf32> to vector<128xf32>
    %265 = vector.shape_cast %264 : vector<128xf32> to vector<1x128xf32>
    %cst_200 = arith.constant 5.000000e-01 : f32
    %266 = vector.broadcast %cst_200 : f32 to vector<1x128xf32>
    %267 = arith.mulf %265, %266 : vector<1x128xf32>
    %c4 = arith.constant 4 : index
    %c0_201 = arith.constant 0 : index
    %268 = vector.load %arg1[%c4, %c0_201] : memref<8x128xf32, #tpu.memory_space<vmem>>, vector<1x128xf32>
    %cst_202 = arith.constant 9.99999974E-6 : f32
    %269 = vector.broadcast %cst_202 : f32 to vector<1x128xf32>
    %270 = arith.addf %267, %269 : vector<1x128xf32>
    %271 = math.rsqrt %270 : vector<1x128xf32>
    %272 = arith.mulf %268, %271 : vector<1x128xf32>
    %273 = vector.broadcast %272 : vector<1x128xf32> to vector<8x128xf32>
    %274 = arith.mulf %262, %273 : vector<8x128xf32>
    %c4_203 = arith.constant 4 : index
    %c0_204 = arith.constant 0 : index
    %275 = vector.load %arg2[%c4_203, %c0_204] : memref<8x128xf32, #tpu.memory_space<vmem>>, vector<1x128xf32>
    %276 = vector.broadcast %275 : vector<1x128xf32> to vector<8x128xf32>
    %277 = arith.addf %274, %276 : vector<8x128xf32>
    %cst_205 = arith.constant 0.000000e+00 : f32
    %278 = vector.broadcast %cst_205 : f32 to vector<8x128xf32>
    %279 = arith.maximumf %277, %278 : vector<8x128xf32>
    %280 = arith.mulf %279, %5 : vector<8x128xf32>
    %c9_i32_206 = arith.constant 9 : i32
    %c1_i32_207 = arith.constant 1 : i32
    %c1_i32_208 = arith.constant 1 : i32
    %c0_i32_209 = arith.constant 0 : i32
    %c0_i32_210 = arith.constant 0 : i32
    %281 = tpu.memref_slice %arg3[%c9_i32_206, %c0_i32_209, %c0_i32_210] : memref<13x128x128xbf16, #tpu.memory_space<any>> -> memref<1x128x128xbf16, #tpu.memory_space<any>>
    %282 = tpu.memref_squeeze %281 : memref<1x128x128xbf16, #tpu.memory_space<any>> -> memref<128x128xbf16, #tpu.memory_space<any>>
    %c0_i32_211 = arith.constant 0 : i32
    %c0_i32_212 = arith.constant 0 : i32
    %283 = tpu.memref_slice %arg5[%c1_i32_207, %c0_i32_211, %c0_i32_212] : memref<2x128x128xbf16, #tpu.memory_space<vmem>> -> memref<1x128x128xbf16, #tpu.memory_space<vmem>>
    %284 = tpu.memref_squeeze %283 : memref<1x128x128xbf16, #tpu.memory_space<vmem>> -> memref<128x128xbf16, #tpu.memory_space<vmem>>
    %285 = tpu.memref_slice %arg6[%c1_i32_208] : memref<2x!tpu.dma_semaphore, #tpu.memory_space<semaphore_mem>> -> memref<1x!tpu.dma_semaphore, #tpu.memory_space<semaphore_mem>>
    %286 = tpu.memref_squeeze %285 : memref<1x!tpu.dma_semaphore, #tpu.memory_space<semaphore_mem>> -> memref<!tpu.dma_semaphore, #tpu.memory_space<semaphore_mem>>
    tpu.wait_dma2 semaphore(%286 : memref<!tpu.dma_semaphore, #tpu.memory_space<semaphore_mem>>) src(%282 : memref<128x128xbf16, #tpu.memory_space<any>>) dst(%284 : memref<128x128xbf16, #tpu.memory_space<vmem>>)
    %c10_i32 = arith.constant 10 : i32
    %c0_i32_213 = arith.constant 0 : i32
    %c0_i32_214 = arith.constant 0 : i32
    %c0_i32_215 = arith.constant 0 : i32
    %c0_i32_216 = arith.constant 0 : i32
    %287 = tpu.memref_slice %arg3[%c10_i32, %c0_i32_215, %c0_i32_216] : memref<13x128x128xbf16, #tpu.memory_space<any>> -> memref<1x128x128xbf16, #tpu.memory_space<any>>
    %288 = tpu.memref_squeeze %287 : memref<1x128x128xbf16, #tpu.memory_space<any>> -> memref<128x128xbf16, #tpu.memory_space<any>>
    %c0_i32_217 = arith.constant 0 : i32
    %c0_i32_218 = arith.constant 0 : i32
    %289 = tpu.memref_slice %arg5[%c0_i32_213, %c0_i32_217, %c0_i32_218] : memref<2x128x128xbf16, #tpu.memory_space<vmem>> -> memref<1x128x128xbf16, #tpu.memory_space<vmem>>
    %290 = tpu.memref_squeeze %289 : memref<1x128x128xbf16, #tpu.memory_space<vmem>> -> memref<128x128xbf16, #tpu.memory_space<vmem>>
    %291 = tpu.memref_slice %arg6[%c0_i32_214] : memref<2x!tpu.dma_semaphore, #tpu.memory_space<semaphore_mem>> -> memref<1x!tpu.dma_semaphore, #tpu.memory_space<semaphore_mem>>
    %292 = tpu.memref_squeeze %291 : memref<1x!tpu.dma_semaphore, #tpu.memory_space<semaphore_mem>> -> memref<!tpu.dma_semaphore, #tpu.memory_space<semaphore_mem>>
    tpu.enqueue_dma source(%288 : memref<128x128xbf16, #tpu.memory_space<any>>) target(%290 : memref<128x128xbf16, #tpu.memory_space<vmem>>) target_semaphore(%292 : memref<!tpu.dma_semaphore, #tpu.memory_space<semaphore_mem>>)
    %293 = arith.truncf %280 : vector<8x128xf32> to vector<8x128xbf16>
    %c1_219 = arith.constant 1 : index
    %c0_220 = arith.constant 0 : index
    %c0_221 = arith.constant 0 : index
    %294 = vector.load %arg5[%c1_219, %c0_220, %c0_221] : memref<2x128x128xbf16, #tpu.memory_space<vmem>>, vector<1x128x128xbf16>
    %295 = vector.shape_cast %294 : vector<1x128x128xbf16> to vector<128x128xbf16>
    %cst_222 = arith.constant dense<0.000000e+00> : vector<8x128xf32>
    %296 = tpu.matmul %293, %295, %cst_222 {dimension_numbers = #tpu.dot_dimension_numbers<[1], [0], [0], [1], [0, 0, 1, 1], [], []>} : vector<8x128xbf16>, vector<128x128xbf16>, vector<8x128xf32> -> vector<8x128xf32>
    %c10_i32_223 = arith.constant 10 : i32
    %c0_i32_224 = arith.constant 0 : i32
    %c0_i32_225 = arith.constant 0 : i32
    %c0_i32_226 = arith.constant 0 : i32
    %c0_i32_227 = arith.constant 0 : i32
    %297 = tpu.memref_slice %arg3[%c10_i32_223, %c0_i32_226, %c0_i32_227] : memref<13x128x128xbf16, #tpu.memory_space<any>> -> memref<1x128x128xbf16, #tpu.memory_space<any>>
    %298 = tpu.memref_squeeze %297 : memref<1x128x128xbf16, #tpu.memory_space<any>> -> memref<128x128xbf16, #tpu.memory_space<any>>
    %c0_i32_228 = arith.constant 0 : i32
    %c0_i32_229 = arith.constant 0 : i32
    %299 = tpu.memref_slice %arg5[%c0_i32_224, %c0_i32_228, %c0_i32_229] : memref<2x128x128xbf16, #tpu.memory_space<vmem>> -> memref<1x128x128xbf16, #tpu.memory_space<vmem>>
    %300 = tpu.memref_squeeze %299 : memref<1x128x128xbf16, #tpu.memory_space<vmem>> -> memref<128x128xbf16, #tpu.memory_space<vmem>>
    %301 = tpu.memref_slice %arg6[%c0_i32_225] : memref<2x!tpu.dma_semaphore, #tpu.memory_space<semaphore_mem>> -> memref<1x!tpu.dma_semaphore, #tpu.memory_space<semaphore_mem>>
    %302 = tpu.memref_squeeze %301 : memref<1x!tpu.dma_semaphore, #tpu.memory_space<semaphore_mem>> -> memref<!tpu.dma_semaphore, #tpu.memory_space<semaphore_mem>>
    tpu.wait_dma2 semaphore(%302 : memref<!tpu.dma_semaphore, #tpu.memory_space<semaphore_mem>>) src(%298 : memref<128x128xbf16, #tpu.memory_space<any>>) dst(%300 : memref<128x128xbf16, #tpu.memory_space<vmem>>)
    %c11_i32 = arith.constant 11 : i32
    %c1_i32_230 = arith.constant 1 : i32
    %c1_i32_231 = arith.constant 1 : i32
    %c0_i32_232 = arith.constant 0 : i32
    %c0_i32_233 = arith.constant 0 : i32
    %303 = tpu.memref_slice %arg3[%c11_i32, %c0_i32_232, %c0_i32_233] : memref<13x128x128xbf16, #tpu.memory_space<any>> -> memref<1x128x128xbf16, #tpu.memory_space<any>>
    %304 = tpu.memref_squeeze %303 : memref<1x128x128xbf16, #tpu.memory_space<any>> -> memref<128x128xbf16, #tpu.memory_space<any>>
    %c0_i32_234 = arith.constant 0 : i32
    %c0_i32_235 = arith.constant 0 : i32
    %305 = tpu.memref_slice %arg5[%c1_i32_230, %c0_i32_234, %c0_i32_235] : memref<2x128x128xbf16, #tpu.memory_space<vmem>> -> memref<1x128x128xbf16, #tpu.memory_space<vmem>>
    %306 = tpu.memref_squeeze %305 : memref<1x128x128xbf16, #tpu.memory_space<vmem>> -> memref<128x128xbf16, #tpu.memory_space<vmem>>
    %307 = tpu.memref_slice %arg6[%c1_i32_231] : memref<2x!tpu.dma_semaphore, #tpu.memory_space<semaphore_mem>> -> memref<1x!tpu.dma_semaphore, #tpu.memory_space<semaphore_mem>>
    %308 = tpu.memref_squeeze %307 : memref<1x!tpu.dma_semaphore, #tpu.memory_space<semaphore_mem>> -> memref<!tpu.dma_semaphore, #tpu.memory_space<semaphore_mem>>
    tpu.enqueue_dma source(%304 : memref<128x128xbf16, #tpu.memory_space<any>>) target(%306 : memref<128x128xbf16, #tpu.memory_space<vmem>>) target_semaphore(%308 : memref<!tpu.dma_semaphore, #tpu.memory_space<semaphore_mem>>)
    %309 = arith.truncf %296 : vector<8x128xf32> to vector<8x128xbf16>
    %c0_236 = arith.constant 0 : index
    %c0_237 = arith.constant 0 : index
    %c0_238 = arith.constant 0 : index
    %310 = vector.load %arg5[%c0_236, %c0_237, %c0_238] : memref<2x128x128xbf16, #tpu.memory_space<vmem>>, vector<1x128x128xbf16>
    %311 = vector.shape_cast %310 : vector<1x128x128xbf16> to vector<128x128xbf16>
    %cst_239 = arith.constant dense<0.000000e+00> : vector<8x128xf32>
    %312 = tpu.matmul %309, %311, %cst_239 {dimension_numbers = #tpu.dot_dimension_numbers<[1], [0], [0], [1], [0, 0, 1, 1], [], []>} : vector<8x128xbf16>, vector<128x128xbf16>, vector<8x128xf32> -> vector<8x128xf32>
    %cst_240 = arith.constant dense<0.000000e+00> : vector<128xf32>
    %313 = vector.multi_reduction <add>, %312, %cst_240 [0] : vector<8x128xf32> to vector<128xf32>
    %314 = vector.shape_cast %313 : vector<128xf32> to vector<1x128xf32>
    %cst_241 = arith.constant 5.000000e-01 : f32
    %315 = vector.broadcast %cst_241 : f32 to vector<1x128xf32>
    %316 = arith.mulf %314, %315 : vector<1x128xf32>
    %317 = vector.broadcast %316 : vector<1x128xf32> to vector<8x128xf32>
    %318 = arith.subf %312, %317 : vector<8x128xf32>
    %319 = arith.mulf %318, %5 : vector<8x128xf32>
    %320 = arith.mulf %319, %319 : vector<8x128xf32>
    %cst_242 = arith.constant dense<0.000000e+00> : vector<128xf32>
    %321 = vector.multi_reduction <add>, %320, %cst_242 [0] : vector<8x128xf32> to vector<128xf32>
    %322 = vector.shape_cast %321 : vector<128xf32> to vector<1x128xf32>
    %cst_243 = arith.constant 5.000000e-01 : f32
    %323 = vector.broadcast %cst_243 : f32 to vector<1x128xf32>
    %324 = arith.mulf %322, %323 : vector<1x128xf32>
    %c5 = arith.constant 5 : index
    %c0_244 = arith.constant 0 : index
    %325 = vector.load %arg1[%c5, %c0_244] : memref<8x128xf32, #tpu.memory_space<vmem>>, vector<1x128xf32>
    %cst_245 = arith.constant 9.99999974E-6 : f32
    %326 = vector.broadcast %cst_245 : f32 to vector<1x128xf32>
    %327 = arith.addf %324, %326 : vector<1x128xf32>
    %328 = math.rsqrt %327 : vector<1x128xf32>
    %329 = arith.mulf %325, %328 : vector<1x128xf32>
    %330 = vector.broadcast %329 : vector<1x128xf32> to vector<8x128xf32>
    %331 = arith.mulf %319, %330 : vector<8x128xf32>
    %c5_246 = arith.constant 5 : index
    %c0_247 = arith.constant 0 : index
    %332 = vector.load %arg2[%c5_246, %c0_247] : memref<8x128xf32, #tpu.memory_space<vmem>>, vector<1x128xf32>
    %333 = vector.broadcast %332 : vector<1x128xf32> to vector<8x128xf32>
    %334 = arith.addf %331, %333 : vector<8x128xf32>
    %cst_248 = arith.constant 0.000000e+00 : f32
    %335 = vector.broadcast %cst_248 : f32 to vector<8x128xf32>
    %336 = arith.maximumf %334, %335 : vector<8x128xf32>
    %337 = arith.mulf %336, %5 : vector<8x128xf32>
    %c11_i32_249 = arith.constant 11 : i32
    %c1_i32_250 = arith.constant 1 : i32
    %c1_i32_251 = arith.constant 1 : i32
    %c0_i32_252 = arith.constant 0 : i32
    %c0_i32_253 = arith.constant 0 : i32
    %338 = tpu.memref_slice %arg3[%c11_i32_249, %c0_i32_252, %c0_i32_253] : memref<13x128x128xbf16, #tpu.memory_space<any>> -> memref<1x128x128xbf16, #tpu.memory_space<any>>
    %339 = tpu.memref_squeeze %338 : memref<1x128x128xbf16, #tpu.memory_space<any>> -> memref<128x128xbf16, #tpu.memory_space<any>>
    %c0_i32_254 = arith.constant 0 : i32
    %c0_i32_255 = arith.constant 0 : i32
    %340 = tpu.memref_slice %arg5[%c1_i32_250, %c0_i32_254, %c0_i32_255] : memref<2x128x128xbf16, #tpu.memory_space<vmem>> -> memref<1x128x128xbf16, #tpu.memory_space<vmem>>
    %341 = tpu.memref_squeeze %340 : memref<1x128x128xbf16, #tpu.memory_space<vmem>> -> memref<128x128xbf16, #tpu.memory_space<vmem>>
    %342 = tpu.memref_slice %arg6[%c1_i32_251] : memref<2x!tpu.dma_semaphore, #tpu.memory_space<semaphore_mem>> -> memref<1x!tpu.dma_semaphore, #tpu.memory_space<semaphore_mem>>
    %343 = tpu.memref_squeeze %342 : memref<1x!tpu.dma_semaphore, #tpu.memory_space<semaphore_mem>> -> memref<!tpu.dma_semaphore, #tpu.memory_space<semaphore_mem>>
    tpu.wait_dma2 semaphore(%343 : memref<!tpu.dma_semaphore, #tpu.memory_space<semaphore_mem>>) src(%339 : memref<128x128xbf16, #tpu.memory_space<any>>) dst(%341 : memref<128x128xbf16, #tpu.memory_space<vmem>>)
    %c12_i32 = arith.constant 12 : i32
    %c0_i32_256 = arith.constant 0 : i32
    %c0_i32_257 = arith.constant 0 : i32
    %c0_i32_258 = arith.constant 0 : i32
    %c0_i32_259 = arith.constant 0 : i32
    %344 = tpu.memref_slice %arg3[%c12_i32, %c0_i32_258, %c0_i32_259] : memref<13x128x128xbf16, #tpu.memory_space<any>> -> memref<1x128x128xbf16, #tpu.memory_space<any>>
    %345 = tpu.memref_squeeze %344 : memref<1x128x128xbf16, #tpu.memory_space<any>> -> memref<128x128xbf16, #tpu.memory_space<any>>
    %c0_i32_260 = arith.constant 0 : i32
    %c0_i32_261 = arith.constant 0 : i32
    %346 = tpu.memref_slice %arg5[%c0_i32_256, %c0_i32_260, %c0_i32_261] : memref<2x128x128xbf16, #tpu.memory_space<vmem>> -> memref<1x128x128xbf16, #tpu.memory_space<vmem>>
    %347 = tpu.memref_squeeze %346 : memref<1x128x128xbf16, #tpu.memory_space<vmem>> -> memref<128x128xbf16, #tpu.memory_space<vmem>>
    %348 = tpu.memref_slice %arg6[%c0_i32_257] : memref<2x!tpu.dma_semaphore, #tpu.memory_space<semaphore_mem>> -> memref<1x!tpu.dma_semaphore, #tpu.memory_space<semaphore_mem>>
    %349 = tpu.memref_squeeze %348 : memref<1x!tpu.dma_semaphore, #tpu.memory_space<semaphore_mem>> -> memref<!tpu.dma_semaphore, #tpu.memory_space<semaphore_mem>>
    tpu.enqueue_dma source(%345 : memref<128x128xbf16, #tpu.memory_space<any>>) target(%347 : memref<128x128xbf16, #tpu.memory_space<vmem>>) target_semaphore(%349 : memref<!tpu.dma_semaphore, #tpu.memory_space<semaphore_mem>>)
    %350 = arith.truncf %337 : vector<8x128xf32> to vector<8x128xbf16>
    %c1_262 = arith.constant 1 : index
    %c0_263 = arith.constant 0 : index
    %c0_264 = arith.constant 0 : index
    %351 = vector.load %arg5[%c1_262, %c0_263, %c0_264] : memref<2x128x128xbf16, #tpu.memory_space<vmem>>, vector<1x128x128xbf16>
    %352 = vector.shape_cast %351 : vector<1x128x128xbf16> to vector<128x128xbf16>
    %cst_265 = arith.constant dense<0.000000e+00> : vector<8x128xf32>
    %353 = tpu.matmul %350, %352, %cst_265 {dimension_numbers = #tpu.dot_dimension_numbers<[1], [0], [0], [1], [0, 0, 1, 1], [], []>} : vector<8x128xbf16>, vector<128x128xbf16>, vector<8x128xf32> -> vector<8x128xf32>
    %c12_i32_266 = arith.constant 12 : i32
    %c0_i32_267 = arith.constant 0 : i32
    %c0_i32_268 = arith.constant 0 : i32
    %c0_i32_269 = arith.constant 0 : i32
    %c0_i32_270 = arith.constant 0 : i32
    %354 = tpu.memref_slice %arg3[%c12_i32_266, %c0_i32_269, %c0_i32_270] : memref<13x128x128xbf16, #tpu.memory_space<any>> -> memref<1x128x128xbf16, #tpu.memory_space<any>>
    %355 = tpu.memref_squeeze %354 : memref<1x128x128xbf16, #tpu.memory_space<any>> -> memref<128x128xbf16, #tpu.memory_space<any>>
    %c0_i32_271 = arith.constant 0 : i32
    %c0_i32_272 = arith.constant 0 : i32
    %356 = tpu.memref_slice %arg5[%c0_i32_267, %c0_i32_271, %c0_i32_272] : memref<2x128x128xbf16, #tpu.memory_space<vmem>> -> memref<1x128x128xbf16, #tpu.memory_space<vmem>>
    %357 = tpu.memref_squeeze %356 : memref<1x128x128xbf16, #tpu.memory_space<vmem>> -> memref<128x128xbf16, #tpu.memory_space<vmem>>
    %358 = tpu.memref_slice %arg6[%c0_i32_268] : memref<2x!tpu.dma_semaphore, #tpu.memory_space<semaphore_mem>> -> memref<1x!tpu.dma_semaphore, #tpu.memory_space<semaphore_mem>>
    %359 = tpu.memref_squeeze %358 : memref<1x!tpu.dma_semaphore, #tpu.memory_space<semaphore_mem>> -> memref<!tpu.dma_semaphore, #tpu.memory_space<semaphore_mem>>
    tpu.wait_dma2 semaphore(%359 : memref<!tpu.dma_semaphore, #tpu.memory_space<semaphore_mem>>) src(%355 : memref<128x128xbf16, #tpu.memory_space<any>>) dst(%357 : memref<128x128xbf16, #tpu.memory_space<vmem>>)
    %360 = arith.truncf %353 : vector<8x128xf32> to vector<8x128xbf16>
    %c0_273 = arith.constant 0 : index
    %c0_274 = arith.constant 0 : index
    %c0_275 = arith.constant 0 : index
    %361 = vector.load %arg5[%c0_273, %c0_274, %c0_275] : memref<2x128x128xbf16, #tpu.memory_space<vmem>>, vector<1x128x128xbf16>
    %362 = vector.shape_cast %361 : vector<1x128x128xbf16> to vector<128x128xbf16>
    %cst_276 = arith.constant dense<0.000000e+00> : vector<8x128xf32>
    %363 = tpu.matmul %360, %362, %cst_276 {dimension_numbers = #tpu.dot_dimension_numbers<[1], [0], [0], [1], [0, 0, 1, 1], [], []>} : vector<8x128xbf16>, vector<128x128xbf16>, vector<8x128xf32> -> vector<8x128xf32>
    %c0_277 = arith.constant 0 : index
    %c0_278 = arith.constant 0 : index
    %364 = vector.load %arg4[%c0_277, %c0_278] : memref<8x128xf32, #tpu.memory_space<vmem>>, vector<8x128xf32>
    tpu.vector_store %arg4[%c0_277, %c0_278], %363 {strides = array<i32>} : memref<8x128xf32, #tpu.memory_space<vmem>>, vector<8x128xf32>,
    return
  }
}

</mosaic_0001>

<bundles_post_ra>
// kernel: bayesian_decoder_forward.1
= control target key start
LH: loop header
LB: loop body
LE: loop exit
PB: predicated region body
PF: predicated region fallthrough
CT: control target
= control target key end

     0   :  { %v17_v0 = vlaneseq  ;;  %s1816_s17 = smov [#allocation2]   ;;  %s2332_s0 = inlined_call_operand.vmem [shape: f32[8,128], index: 0, kind: input, shape index: {}]   ;;  %s2333_s1 = inlined_call_operand.vmem [shape: f32[8,128], index: 1, kind: input, shape index: {}]   ;;  %s2334_s2 = inlined_call_operand.vmem [shape: f32[8,128], index: 2, kind: input, shape index: {}]   ;;  %s2335_s3 = inlined_call_operand.hbm [shape: bf16[13,128,128], index: 3, kind: input, shape index: {}]   ;;  %s2336_s4 = inlined_call_operand.vmem [shape: f32[8,128], index: 4, kind: output, shape index: {}]  }
   0x1   :  { %v1848_v1 = vld [vmem:[%s2332_s0] sm:$0xff]  ;;  %s29_s18 = sshll.u32 %s1816_s17, 4  ;;  %s1857_s21 = scalar_lea.hbm %s2335_s3, 1024  ;;  %s1852_s18 = int_to_ptr.vmem [resolvable:$true] %s29_s18 }
   0x2   :  { %v1850_v2 = vshrl.u32 %v17_v0, 7  ;;  %p1469_p0 = scmp.ne.s32.totalorder %s2335_s3, %s1857_s21  ;;  %s1866_s25 = scalar_lea.hbm %s2335_s3, 13312 }
   0x3   :  { %p1471_p1 = scmp.lt.u32.totalorder %s1866_s25, %s1857_s21  ;;  %p1472_p2 = scmp.lt.u32.totalorder %s1857_s21, %s2335_s3 }
   0x5   :  { %p1473_p3 = por %p1472_p2, %p1471_p1 }
   0x7   :  { %p1474_p4 = pnand %p1473_p3, %p1469_p0 }
   0x9   :  { %1477 = shalt.err (!%p1474_p4)  }
   0xa   :  { %s1478_s30 = scalar_lea.vmem %s1852_s18, 1024  ;;  %s1482_s5 = scalar_lea.vmem %s1852_s18, 2048 }
   0xb   :  { %p1479_p5 = scmp.ne.s32.totalorder %s1852_s18, %s1478_s30  ;;  %p1483_p6 = scmp.lt.s32.totalorder %s1852_s18, %s1852_s18 }
   0xc   :  { %p1484_p7 = scmp.lt.s32.totalorder %s1482_s5, %s1478_s30 }
   0xe   :  { %p1485_p8 = por %p1484_p7, %p1483_p6 }
  0x10   :  { %p1886_p9 = pnand %p1485_p8, %p1479_p5 }
  0x12   :  { %1489 = shalt.err (!%p1886_p9)  }
  0x13   :  { %32 = dma.hbm_to_vmem [thread:$0]  %s2335_s3, 1024, %s1852_s18, [#allocation3]  ;;  %vm19_vm0 = vcmp.lt.s32.totalorder %v1850_v2, 2  ;;  %v1817_v3 = vmov 0.0  }
  0x14   :  { %v1898_v4 = vsel %vm19_vm0, 1.0, %v1817_v3 }
  0x15   :  { %1790 = dma.done.wait [#allocation3], 1024 }
  0x16   :  { %1791 = vsyncadd [#allocation3], 4294966272  ;;  %1192 = vmatprep.subr.bf16.mxu0 %v1817_v3  ;;  %s1818_s9 = smov [#allocation2 + $0x40]   ;;  %vm1819_vm1 = vmmov 0   ;;  %s1908_s13 = scalar_lea.hbm %s2335_s3, 2048 }
  0x17   :  { %s47_s10 = sshll.u32 %s1818_s9, 4  ;;  %1208 = vmatprep.mubr.msk.bf16.mxu0 %vm1819_vm1, %v1817_v3  ;;  %p1491_p10 = scmp.ne.s32.totalorder %s1857_s21, %s1908_s13  ;;  %s1903_s10 = int_to_ptr.vmem [resolvable:$true] %s47_s10 }
  0x18   :  { %p1494_p11 = scmp.lt.u32.totalorder %s1866_s25, %s1908_s13  ;;  %p1496_p13 = scmp.lt.u32.totalorder %s1908_s13, %s1857_s21 }
  0x1a   :  { %p1495_p12 = por %p1494_p11, %p1472_p2 }
  0x1c   :  { %p1497_p0 = por %p1496_p13, %p1495_p12 }
  0x1e   :  { %p1498_p1 = pnand %p1497_p0, %p1491_p10 }
  0x20   :  { %1501 = shalt.err (!%p1498_p1)  }
  0x21   :  { %s1502_s16 = scalar_lea.vmem %s1903_s10, 1024  ;;  %p1507_p4 = scmp.lt.s32.totalorder %s1903_s10, %s1852_s18 }
  0x22   :  { %p1503_p3 = scmp.ne.s32.totalorder %s1903_s10, %s1502_s16  ;;  %p1508_p5 = scmp.lt.s32.totalorder %s1482_s5, %s1502_s16 }
  0x24   :  { %p1509_p6 = por %p1508_p5, %p1507_p4 }
  0x26   :  { %p1927_p7 = pnand %p1509_p6, %p1503_p3 }
  0x28   :  { %1513 = shalt.err (!%p1927_p7)  }
  0x29   :  { %50 = dma.hbm_to_vmem [thread:$0]  %s1857_s21, 1024, %s1903_s10, [#allocation3 + $0x1]  ;;  %v51_v13 = vpack.c.bf16 %v1848_v1, %v1848_v1  ;;  %v117_v36 = vld [vmem:[%s2333_s1] sm:$0x1]  ;;  %v1949_v37 = vsub.s32 0, %v1850_v2 }
  0x2a   :  { %v52_v5 = vld [vmem:[#allocation2] sm:$0xff]  ;;  %v53_v6 = vld [vmem:[#allocation2 + $0x8] sm:$0xff]  ;;  %v54_v7 = vld [vmem:[#allocation2 + $0x10] sm:$0xff] }
  0x2b   :  { %1193 = vmatpush3.bf16.msra.mxu0 %v52_v5  ;;  %v55_v8 = vld [vmem:[#allocation2 + $0x18] sm:$0xff]  ;;  %v56_v9 = vld [vmem:[#allocation2 + $0x20] sm:$0xff]  ;;  %v57_v10 = vld [vmem:[#allocation2 + $0x28] sm:$0xff] }
  0x2c   :  { %1194 = vmatprep.subr.bf16.mxu0 %v1817_v3  ;;  %v58_v11 = vld [vmem:[#allocation2 + $0x30] sm:$0xff]  ;;  %v59_v12 = vld [vmem:[#allocation2 + $0x38] sm:$0xff]  ;;  %v1067_v41 = vld [vmem:[%s2334_s2] ss:$0 sm:$0xff] }
  0x2f   :  { %1195 = vmatpush3.bf16.msra.mxu0 %v53_v6 }
  0x30   :  { %1196 = vmatprep.subr.bf16.mxu0 %v1817_v3 }
  0x33   :  { %1197 = vmatpush3.bf16.msra.mxu0 %v54_v7 }
  0x34   :  { %1198 = vmatprep.subr.bf16.mxu0 %v1817_v3 }
  0x37   :  { %1199 = vmatpush3.bf16.msra.mxu0 %v55_v8 }
  0x38   :  { %1200 = vmatprep.subr.bf16.mxu0 %v1817_v3 }
  0x3b   :  { %1201 = vmatpush3.bf16.msra.mxu0 %v56_v9 }
  0x3c   :  { %1202 = vmatprep.subr.bf16.mxu0 %v1817_v3 }
  0x3f   :  { %1203 = vmatpush3.bf16.msra.mxu0 %v57_v10 }
  0x40   :  { %1204 = vmatprep.subr.bf16.mxu0 %v1817_v3 }
  0x43   :  { %1205 = vmatpush3.bf16.msra.mxu0 %v58_v11 }
  0x44   :  { %1206 = vmatprep.subr.bf16.mxu0 %v1817_v3 }
  0x47   :  { %1207 = vmatpush3.bf16.msra.mxu0 %v59_v12 }
  0x4a   :  { %1209 = vmatmul.mubr.bf16.vlgmr.msra.gmra.mrb[0].mxu0 %v51_v13 }
 0x11d   :  { %v94_v14 = vpop.f32.mrb[0].mxu0 }
 0x11e   :  { %v100_v15 = vrot.slane %v94_v14, 4  ;;  %v1210_v16 = vpop.f32.mrb[1].mxu0 }
 0x11f   :  { %v97_v17 = vpop.f32.mrb[2].mxu0 }
 0x120   :  { %v101_v18 = vadd.f32 %v100_v15, %v94_v14  ;;  %v1211_v19 = vpop.f32.mrb[3].mxu0 }
 0x122   :  { %v102_v20 = vrot.slane %v101_v18, 2 }
 0x124   :  { %v103_v21 = vadd.f32 %v102_v20, %v101_v18 }
 0x126   :  { %v104_v22 = vrot.slane %v103_v21, 1 }
 0x128   :  { %v105_v23 = vadd.f32 %v104_v22, %v103_v21 }
 0x12a   :  { %v106_v24 = vmul.f32 0.5, %v105_v23 }
 0x12c   :  { %v107_v25 = vsub.f32 %v94_v14, %v106_v24 }
 0x12e   :  { %v108_v26 = vmul.f32 %v1898_v4, %v107_v25 }
 0x130   :  { %v109_v27 = vmul.f32 %v108_v26, %v108_v26 }
 0x132   :  { %v110_v28 = vrot.slane %v109_v27, 4 }
 0x134   :  { %v111_v29 = vadd.f32 %v110_v28, %v109_v27 }
 0x136   :  { %v112_v30 = vrot.slane %v111_v29, 2 }
 0x138   :  { %v113_v31 = vadd.f32 %v112_v30, %v111_v29 }
 0x13a   :  { %v114_v32 = vrot.slane %v113_v31, 1 }
 0x13c   :  { %v115_v33 = vadd.f32 %v114_v32, %v113_v31 }
 0x13e   :  { %v116_v34 = vmul.f32 0.5, %v115_v33 }
 0x140   :  { %v118_v35 = vadd.f32 1e-05, %v116_v34 }
 0x142   :  { %1456 = vrsqrt.f32 %v118_v35 }
 0x14c   :  { %v1457_v38 = vpop.eup %1456 }
 0x14d   :  { %v120_v39 = vmul.f32 %v1457_v38, %v117_v36 }
 0x14f   :  { %v124_v40 = vrot.slane %v120_v39, %v1949_v37 }
 0x151   :  { %v125_v42 = vmul.f32 %v124_v40, %v108_v26 }
 0x153   :  { %v131_v43 = vadd.f32 %v1067_v41, %v125_v42 }
 0x155   :  { %v132_v44 = vmax.f32 %v131_v43, 0.0 }
 0x157   :  { %v133_v45 = vmul.f32 %v1898_v4, %v132_v44 }
 0x158   :  { %1792 = dma.done.wait [#allocation3 + $0x1], 1024 }
 0x159   :  { %1793 = vsyncadd [#allocation3 + $0x1], 4294966272  ;;  %1212 = vmatprep.subr.bf16.mxu1 %v1817_v3  ;;  %1228 = vmatprep.mubr.msk.bf16.mxu1 %vm1819_vm1, %v1817_v3  ;;  %s1962_s24 = scalar_lea.hbm %s2335_s3, 3072  ;;  %p1518_p8 = scmp.lt.u32.totalorder %s1908_s13, %s2335_s3 }
 0x15a   :  { %p1516_p2 = scmp.ne.s32.totalorder %s1908_s13, %s1962_s24  ;;  %p1519_p10 = scmp.lt.u32.totalorder %s1866_s25, %s1962_s24 }
 0x15b   :  { %p1521_p12 = scmp.lt.u32.totalorder %s1962_s24, %s1908_s13 }
 0x15c   :  { %p1520_p11 = por %p1519_p10, %p1518_p8 }
 0x15e   :  { %p1522_p13 = por %p1521_p12, %p1520_p11 }
 0x160   :  { %p1523_p0 = pnand %p1522_p13, %p1516_p2 }
 0x162   :  { %1526 = shalt.err (!%p1523_p0)  }
 0x163   :  { %1538 = shalt.err (!%p1886_p9)  }
 0x164   :  { %147 = dma.hbm_to_vmem [thread:$0]  %s1908_s13, 1024, %s1852_s18, [#allocation3]  ;;  %v148_v54 = vpack.c.bf16 %v133_v45, %v133_v45 }
 0x165   :  { %v149_v46 = vld [vmem:[#allocation2 + $0x40] sm:$0xff]  ;;  %v150_v47 = vld [vmem:[#allocation2 + $0x48] sm:$0xff]  ;;  %v151_v48 = vld [vmem:[#allocation2 + $0x50] sm:$0xff] }
 0x166   :  { %1213 = vmatpush3.bf16.msra.mxu1 %v149_v46  ;;  %v152_v49 = vld [vmem:[#allocation2 + $0x58] sm:$0xff]  ;;  %v153_v50 = vld [vmem:[#allocation2 + $0x60] sm:$0xff]  ;;  %v154_v51 = vld [vmem:[#allocation2 + $0x68] sm:$0xff] }
 0x167   :  { %1214 = vmatprep.subr.bf16.mxu1 %v1817_v3  ;;  %v155_v52 = vld [vmem:[#allocation2 + $0x70] sm:$0xff]  ;;  %v156_v53 = vld [vmem:[#allocation2 + $0x78] sm:$0xff] }
 0x16a   :  { %1215 = vmatpush3.bf16.msra.mxu1 %v150_v47 }
 0x16b   :  { %1216 = vmatprep.subr.bf16.mxu1 %v1817_v3 }
 0x16e   :  { %1217 = vmatpush3.bf16.msra.mxu1 %v151_v48 }
 0x16f   :  { %1218 = vmatprep.subr.bf16.mxu1 %v1817_v3 }
 0x172   :  { %1219 = vmatpush3.bf16.msra.mxu1 %v152_v49 }
 0x173   :  { %1220 = vmatprep.subr.bf16.mxu1 %v1817_v3 }
 0x176   :  { %1221 = vmatpush3.bf16.msra.mxu1 %v153_v50 }
 0x177   :  { %1222 = vmatprep.subr.bf16.mxu1 %v1817_v3 }
 0x17a   :  { %1223 = vmatpush3.bf16.msra.mxu1 %v154_v51 }
 0x17b   :  { %1224 = vmatprep.subr.bf16.mxu1 %v1817_v3 }
 0x17e   :  { %1225 = vmatpush3.bf16.msra.mxu1 %v155_v52 }
 0x17f   :  { %1226 = vmatprep.subr.bf16.mxu1 %v1817_v3 }
 0x182   :  { %1227 = vmatpush3.bf16.msra.mxu1 %v156_v53 }
 0x185   :  { %1229 = vmatmul.mubr.bf16.vlgmr.msra.gmra.mrb[0].mxu1 %v148_v54 }
 0x258   :  { %v191_v55 = vpop.f32.mrb[0].mxu1 }
 0x259   :  { %v1230_v56 = vpop.f32.mrb[1].mxu1 }
 0x25a   :  { %v194_v57 = vpop.f32.mrb[2].mxu1 }
 0x25b   :  { %v1231_v58 = vpop.f32.mrb[3].mxu1 }
 0x25c   :  { %1794 = dma.done.wait [#allocation3], 1024 }
 0x25d   :  { %1795 = vsyncadd [#allocation3], 4294966272  ;;  %1232 = vmatprep.subr.bf16.mxu0 %v1817_v3  ;;  %1248 = vmatprep.mubr.msk.bf16.mxu0 %vm1819_vm1, %v1817_v3  ;;  %s1991_s30 = scalar_lea.hbm %s2335_s3, 4096  ;;  %p1543_p3 = scmp.lt.u32.totalorder %s1962_s24, %s2335_s3 }
 0x25e   :  { %p1541_p1 = scmp.ne.s32.totalorder %s1962_s24, %s1991_s30  ;;  %p1544_p4 = scmp.lt.u32.totalorder %s1866_s25, %s1991_s30 }
 0x25f   :  { %p1546_p6 = scmp.lt.u32.totalorder %s1991_s30, %s1962_s24 }
 0x260   :  { %p1545_p5 = por %p1544_p4, %p1543_p3 }
 0x262   :  { %p1547_p2 = por %p1546_p6, %p1545_p5 }
 0x264   :  { %p1548_p8 = pnand %p1547_p2, %p1541_p1 }
 0x266   :  { %1551 = shalt.err (!%p1548_p8)  }
 0x267   :  { %1563 = shalt.err (!%p1927_p7)  }
 0x268   :  { %210 = dma.hbm_to_vmem [thread:$0]  %s1962_s24, 1024, %s1903_s10, [#allocation3 + $0x1]  ;;  %v211_v5 = vpack.c.bf16 %v191_v55, %v191_v55  ;;  %v277_v28 = vld [vmem:[%s2333_s1 + $0x1] sm:$0x1] }
 0x269   :  { %v212_v59 = vld [vmem:[#allocation2] sm:$0xff]  ;;  %v213_v60 = vld [vmem:[#allocation2 + $0x8] sm:$0xff]  ;;  %v214_v61 = vld [vmem:[#allocation2 + $0x10] sm:$0xff] }
 0x26a   :  { %1233 = vmatpush3.bf16.msra.mxu0 %v212_v59  ;;  %v215_v62 = vld [vmem:[#allocation2 + $0x18] sm:$0xff]  ;;  %v216_v63 = vld [vmem:[#allocation2 + $0x20] sm:$0xff]  ;;  %v217_v0 = vld [vmem:[#allocation2 + $0x28] sm:$0xff] }
 0x26b   :  { %1234 = vmatprep.subr.bf16.mxu0 %v1817_v3  ;;  %v218_v1 = vld [vmem:[#allocation2 + $0x30] sm:$0xff]  ;;  %v219_v2 = vld [vmem:[#allocation2 + $0x38] sm:$0xff]  ;;  %v1068_v32 = vld [vmem:[%s2334_s2 + $0x1] ss:$0 sm:$0xff] }
 0x26e   :  { %1235 = vmatpush3.bf16.msra.mxu0 %v213_v60 }
 0x26f   :  { %1236 = vmatprep.subr.bf16.mxu0 %v1817_v3 }
 0x272   :  { %1237 = vmatpush3.bf16.msra.mxu0 %v214_v61 }
 0x273   :  { %1238 = vmatprep.subr.bf16.mxu0 %v1817_v3 }
 0x276   :  { %1239 = vmatpush3.bf16.msra.mxu0 %v215_v62 }
 0x277   :  { %1240 = vmatprep.subr.bf16.mxu0 %v1817_v3 }
 0x27a   :  { %1241 = vmatpush3.bf16.msra.mxu0 %v216_v63 }
 0x27b   :  { %1242 = vmatprep.subr.bf16.mxu0 %v1817_v3 }
 0x27e   :  { %1243 = vmatpush3.bf16.msra.mxu0 %v217_v0 }
 0x27f   :  { %1244 = vmatprep.subr.bf16.mxu0 %v1817_v3 }
 0x282   :  { %1245 = vmatpush3.bf16.msra.mxu0 %v218_v1 }
 0x283   :  { %1246 = vmatprep.subr.bf16.mxu0 %v1817_v3 }
 0x286   :  { %1247 = vmatpush3.bf16.msra.mxu0 %v219_v2 }
 0x289   :  { %1249 = vmatmul.mubr.bf16.vlgmr.msra.gmra.mrb[4].mxu0 %v211_v5 }
 0x35c   :  { %v254_v6 = vpop.f32.mrb[4].mxu0 }
 0x35d   :  { %v260_v7 = vrot.slane %v254_v6, 4  ;;  %v1250_v8 = vpop.f32.mrb[5].mxu0 }
 0x35e   :  { %v257_v9 = vpop.f32.mrb[6].mxu0 }
 0x35f   :  { %v261_v10 = vadd.f32 %v260_v7, %v254_v6  ;;  %v1251_v11 = vpop.f32.mrb[7].mxu0 }
 0x361   :  { %v262_v12 = vrot.slane %v261_v10, 2 }
 0x363   :  { %v263_v13 = vadd.f32 %v262_v12, %v261_v10 }
 0x365   :  { %v264_v14 = vrot.slane %v263_v13, 1 }
 0x367   :  { %v265_v15 = vadd.f32 %v264_v14, %v263_v13 }
 0x369   :  { %v266_v16 = vmul.f32 0.5, %v265_v15 }
 0x36b   :  { %v267_v17 = vsub.f32 %v254_v6, %v266_v16 }
 0x36d   :  { %v268_v18 = vmul.f32 %v1898_v4, %v267_v17 }
 0x36f   :  { %v269_v19 = vmul.f32 %v268_v18, %v268_v18 }
 0x371   :  { %v270_v20 = vrot.slane %v269_v19, 4 }
 0x373   :  { %v271_v21 = vadd.f32 %v270_v20, %v269_v19 }
 0x375   :  { %v272_v22 = vrot.slane %v271_v21, 2 }
 0x377   :  { %v273_v23 = vadd.f32 %v272_v22, %v271_v21 }
 0x379   :  { %v274_v24 = vrot.slane %v273_v23, 1 }
 0x37b   :  { %v275_v25 = vadd.f32 %v274_v24, %v273_v23 }
 0x37d   :  { %v276_v26 = vmul.f32 0.5, %v275_v25 }
 0x37f   :  { %v278_v27 = vadd.f32 1e-05, %v276_v26 }
 0x381   :  { %1458 = vrsqrt.f32 %v278_v27 }
 0x38b   :  { %v1459_v29 = vpop.eup %1458 }
 0x38c   :  { %v280_v30 = vmul.f32 %v1459_v29, %v277_v28 }
 0x38e   :  { %v284_v31 = vrot.slane %v280_v30, %v1949_v37 }
 0x390   :  { %v285_v33 = vmul.f32 %v284_v31, %v268_v18 }
 0x392   :  { %v291_v34 = vadd.f32 %v1068_v32, %v285_v33 }
 0x394   :  { %v292_v35 = vmax.f32 %v291_v34, 0.0 }
 0x396   :  { %v293_v36 = vmul.f32 %v1898_v4, %v292_v35 }
 0x397   :  { %1796 = dma.done.wait [#allocation3 + $0x1], 1024 }
 0x398   :  { %1797 = vsyncadd [#allocation3 + $0x1], 4294966272  ;;  %1252 = vmatprep.subr.bf16.mxu1 %v1817_v3  ;;  %1268 = vmatprep.mubr.msk.bf16.mxu1 %vm1819_vm1, %v1817_v3  ;;  %s2029_s15 = scalar_lea.hbm %s2335_s3, 5120  ;;  %p1568_p11 = scmp.lt.u32.totalorder %s1991_s30, %s2335_s3 }
 0x399   :  { %p1566_p10 = scmp.ne.s32.totalorder %s1991_s30, %s2029_s15  ;;  %p1569_p12 = scmp.lt.u32.totalorder %s1866_s25, %s2029_s15 }
 0x39a   :  { %p1571_p0 = scmp.lt.u32.totalorder %s2029_s15, %s1991_s30 }
 0x39b   :  { %p1570_p13 = por %p1569_p12, %p1568_p11 }
 0x39d   :  { %p1572_p1 = por %p1571_p0, %p1570_p13 }
 0x39f   :  { %p1573_p3 = pnand %p1572_p1, %p1566_p10 }
 0x3a1   :  { %1576 = shalt.err (!%p1573_p3)  }
 0x3a2   :  { %1588 = shalt.err (!%p1886_p9)  }
 0x3a3   :  { %307 = dma.hbm_to_vmem [thread:$0]  %s1991_s30, 1024, %s1852_s18, [#allocation3]  ;;  %v308_v46 = vpack.c.bf16 %v293_v36, %v293_v36 }
 0x3a4   :  { %v309_v38 = vld [vmem:[#allocation2 + $0x40] sm:$0xff]  ;;  %v310_v39 = vld [vmem:[#allocation2 + $0x48] sm:$0xff]  ;;  %v311_v40 = vld [vmem:[#allocation2 + $0x50] sm:$0xff] }
 0x3a5   :  { %1253 = vmatpush3.bf16.msra.mxu1 %v309_v38  ;;  %v312_v41 = vld [vmem:[#allocation2 + $0x58] sm:$0xff]  ;;  %v313_v42 = vld [vmem:[#allocation2 + $0x60] sm:$0xff]  ;;  %v314_v43 = vld [vmem:[#allocation2 + $0x68] sm:$0xff] }
 0x3a6   :  { %1254 = vmatprep.subr.bf16.mxu1 %v1817_v3  ;;  %v315_v44 = vld [vmem:[#allocation2 + $0x70] sm:$0xff]  ;;  %v316_v45 = vld [vmem:[#allocation2 + $0x78] sm:$0xff] }
 0x3a9   :  { %1255 = vmatpush3.bf16.msra.mxu1 %v310_v39 }
 0x3aa   :  { %1256 = vmatprep.subr.bf16.mxu1 %v1817_v3 }
 0x3ad   :  { %1257 = vmatpush3.bf16.msra.mxu1 %v311_v40 }
 0x3ae   :  { %1258 = vmatprep.subr.bf16.mxu1 %v1817_v3 }
 0x3b1   :  { %1259 = vmatpush3.bf16.msra.mxu1 %v312_v41 }
 0x3b2   :  { %1260 = vmatprep.subr.bf16.mxu1 %v1817_v3 }
 0x3b5   :  { %1261 = vmatpush3.bf16.msra.mxu1 %v313_v42 }
 0x3b6   :  { %1262 = vmatprep.subr.bf16.mxu1 %v1817_v3 }
 0x3b9   :  { %1263 = vmatpush3.bf16.msra.mxu1 %v314_v43 }
 0x3ba   :  { %1264 = vmatprep.subr.bf16.mxu1 %v1817_v3 }
 0x3bd   :  { %1265 = vmatpush3.bf16.msra.mxu1 %v315_v44 }
 0x3be   :  { %1266 = vmatprep.subr.bf16.mxu1 %v1817_v3 }
 0x3c1   :  { %1267 = vmatpush3.bf16.msra.mxu1 %v316_v45 }
 0x3c4   :  { %1269 = vmatmul.mubr.bf16.vlgmr.msra.gmra.mrb[4].mxu1 %v308_v46 }
 0x497   :  { %v351_v47 = vpop.f32.mrb[4].mxu1 }
 0x498   :  { %v1270_v48 = vpop.f32.mrb[5].mxu1 }
 0x499   :  { %v354_v49 = vpop.f32.mrb[6].mxu1 }
 0x49a   :  { %v1271_v50 = vpop.f32.mrb[7].mxu1 }
 0x49b   :  { %1798 = dma.done.wait [#allocation3], 1024 }
 0x49c   :  { %1799 = vsyncadd [#allocation3], 4294966272  ;;  %1272 = vmatprep.subr.bf16.mxu0 %v1817_v3  ;;  %1288 = vmatprep.mubr.msk.bf16.mxu0 %vm1819_vm1, %v1817_v3  ;;  %s2058_s22 = scalar_lea.hbm %s2335_s3, 6144  ;;  %p1593_p5 = scmp.lt.u32.totalorder %s2029_s15, %s2335_s3 }
 0x49d   :  { %p1591_p4 = scmp.ne.s32.totalorder %s2029_s15, %s2058_s22  ;;  %p1594_p6 = scmp.lt.u32.totalorder %s1866_s25, %s2058_s22 }
 0x49e   :  { %p1596_p8 = scmp.lt.u32.totalorder %s2058_s22, %s2029_s15 }
 0x49f   :  { %p1595_p2 = por %p1594_p6, %p1593_p5 }
 0x4a1   :  { %p1597_p10 = por %p1596_p8, %p1595_p2 }
 0x4a3   :  { %p1598_p11 = pnand %p1597_p10, %p1591_p4 }
 0x4a5   :  { %1601 = shalt.err (!%p1598_p11)  }
 0x4a6   :  { %1613 = shalt.err (!%p1927_p7)  }
 0x4a7   :  { %370 = dma.hbm_to_vmem [thread:$0]  %s2029_s15, 1024, %s1903_s10, [#allocation3 + $0x1]  ;;  %v371_v59 = vpack.c.bf16 %v351_v47, %v351_v47  ;;  %v437_v20 = vld [vmem:[%s2333_s1 + $0x2] sm:$0x1] }
 0x4a8   :  { %v372_v51 = vld [vmem:[#allocation2] sm:$0xff]  ;;  %v373_v52 = vld [vmem:[#allocation2 + $0x8] sm:$0xff]  ;;  %v374_v53 = vld [vmem:[#allocation2 + $0x10] sm:$0xff] }
 0x4a9   :  { %1273 = vmatpush3.bf16.msra.mxu0 %v372_v51  ;;  %v375_v54 = vld [vmem:[#allocation2 + $0x18] sm:$0xff]  ;;  %v376_v55 = vld [vmem:[#allocation2 + $0x20] sm:$0xff]  ;;  %v377_v56 = vld [vmem:[#allocation2 + $0x28] sm:$0xff] }
 0x4aa   :  { %1274 = vmatprep.subr.bf16.mxu0 %v1817_v3  ;;  %v378_v57 = vld [vmem:[#allocation2 + $0x30] sm:$0xff]  ;;  %v379_v58 = vld [vmem:[#allocation2 + $0x38] sm:$0xff]  ;;  %v1069_v24 = vld [vmem:[%s2334_s2 + $0x2] ss:$0 sm:$0xff] }
 0x4ad   :  { %1275 = vmatpush3.bf16.msra.mxu0 %v373_v52 }
 0x4ae   :  { %1276 = vmatprep.subr.bf16.mxu0 %v1817_v3 }
 0x4b1   :  { %1277 = vmatpush3.bf16.msra.mxu0 %v374_v53 }
 0x4b2   :  { %1278 = vmatprep.subr.bf16.mxu0 %v1817_v3 }
 0x4b5   :  { %1279 = vmatpush3.bf16.msra.mxu0 %v375_v54 }
 0x4b6   :  { %1280 = vmatprep.subr.bf16.mxu0 %v1817_v3 }
 0x4b9   :  { %1281 = vmatpush3.bf16.msra.mxu0 %v376_v55 }
 0x4ba   :  { %1282 = vmatprep.subr.bf16.mxu0 %v1817_v3 }
 0x4bd   :  { %1283 = vmatpush3.bf16.msra.mxu0 %v377_v56 }
 0x4be   :  { %1284 = vmatprep.subr.bf16.mxu0 %v1817_v3 }
 0x4c1   :  { %1285 = vmatpush3.bf16.msra.mxu0 %v378_v57 }
 0x4c2   :  { %1286 = vmatprep.subr.bf16.mxu0 %v1817_v3 }
 0x4c5   :  { %1287 = vmatpush3.bf16.msra.mxu0 %v379_v58 }
 0x4c8   :  { %1289 = vmatmul.mubr.bf16.vlgmr.msra.gmra.mrb[8].mxu0 %v371_v59 }
 0x59b   :  { %v414_v60 = vpop.f32.mrb[8].mxu0 }
 0x59c   :  { %v420_v61 = vrot.slane %v414_v60, 4  ;;  %v1290_v62 = vpop.f32.mrb[9].mxu0 }
 0x59d   :  { %v417_v63 = vpop.f32.mrb[10].mxu0 }
 0x59e   :  { %v421_v0 = vadd.f32 %v420_v61, %v414_v60  ;;  %v1291_v1 = vpop.f32.mrb[11].mxu0 }
 0x5a0   :  { %v422_v2 = vrot.slane %v421_v0, 2 }
 0x5a2   :  { %v423_v5 = vadd.f32 %v422_v2, %v421_v0 }
 0x5a4   :  { %v424_v6 = vrot.slane %v423_v5, 1 }
 0x5a6   :  { %v425_v7 = vadd.f32 %v424_v6, %v423_v5 }
 0x5a8   :  { %v426_v8 = vmul.f32 0.5, %v425_v7 }
 0x5aa   :  { %v427_v9 = vsub.f32 %v414_v60, %v426_v8 }
 0x5ac   :  { %v428_v10 = vmul.f32 %v1898_v4, %v427_v9 }
 0x5ae   :  { %v429_v11 = vmul.f32 %v428_v10, %v428_v10 }
 0x5b0   :  { %v430_v12 = vrot.slane %v429_v11, 4 }
 0x5b2   :  { %v431_v13 = vadd.f32 %v430_v12, %v429_v11 }
 0x5b4   :  { %v432_v14 = vrot.slane %v431_v13, 2 }
 0x5b6   :  { %v433_v15 = vadd.f32 %v432_v14, %v431_v13 }
 0x5b8   :  { %v434_v16 = vrot.slane %v433_v15, 1 }
 0x5ba   :  { %v435_v17 = vadd.f32 %v434_v16, %v433_v15 }
 0x5bc   :  { %v436_v18 = vmul.f32 0.5, %v435_v17 }
 0x5be   :  { %v438_v19 = vadd.f32 1e-05, %v436_v18 }
 0x5c0   :  { %1460 = vrsqrt.f32 %v438_v19 }
 0x5ca   :  { %v1461_v21 = vpop.eup %1460 }
 0x5cb   :  { %v440_v22 = vmul.f32 %v1461_v21, %v437_v20 }
 0x5cd   :  { %v444_v23 = vrot.slane %v440_v22, %v1949_v37 }
 0x5cf   :  { %v445_v25 = vmul.f32 %v444_v23, %v428_v10 }
 0x5d1   :  { %v451_v26 = vadd.f32 %v1069_v24, %v445_v25 }
 0x5d3   :  { %v452_v27 = vmax.f32 %v451_v26, 0.0 }
 0x5d5   :  { %v453_v28 = vmul.f32 %v1898_v4, %v452_v27 }
 0x5d6   :  { %1800 = dma.done.wait [#allocation3 + $0x1], 1024 }
 0x5d7   :  { %1801 = vsyncadd [#allocation3 + $0x1], 4294966272  ;;  %1292 = vmatprep.subr.bf16.mxu1 %v1817_v3  ;;  %1308 = vmatprep.mubr.msk.bf16.mxu1 %vm1819_vm1, %v1817_v3  ;;  %s2096_s5 = scalar_lea.hbm %s2335_s3, 7168  ;;  %p1618_p13 = scmp.lt.u32.totalorder %s2058_s22, %s2335_s3 }
 0x5d8   :  { %p1616_p12 = scmp.ne.s32.totalorder %s2058_s22, %s2096_s5  ;;  %p1619_p0 = scmp.lt.u32.totalorder %s1866_s25, %s2096_s5 }
 0x5d9   :  { %p1621_p3 = scmp.lt.u32.totalorder %s2096_s5, %s2058_s22 }
 0x5da   :  { %p1620_p1 = por %p1619_p0, %p1618_p13 }
 0x5dc   :  { %p1622_p4 = por %p1621_p3, %p1620_p1 }
 0x5de   :  { %p1623_p5 = pnand %p1622_p4, %p1616_p12 }
 0x5e0   :  { %1626 = shalt.err (!%p1623_p5)  }
 0x5e1   :  { %1638 = shalt.err (!%p1886_p9)  }
 0x5e2   :  { %467 = dma.hbm_to_vmem [thread:$0]  %s2058_s22, 1024, %s1852_s18, [#allocation3]  ;;  %v468_v38 = vpack.c.bf16 %v453_v28, %v453_v28 }
 0x5e3   :  { %v469_v29 = vld [vmem:[#allocation2 + $0x40] sm:$0xff]  ;;  %v470_v30 = vld [vmem:[#allocation2 + $0x48] sm:$0xff]  ;;  %v471_v31 = vld [vmem:[#allocation2 + $0x50] sm:$0xff] }
 0x5e4   :  { %1293 = vmatpush3.bf16.msra.mxu1 %v469_v29  ;;  %v472_v32 = vld [vmem:[#allocation2 + $0x58] sm:$0xff]  ;;  %v473_v33 = vld [vmem:[#allocation2 + $0x60] sm:$0xff]  ;;  %v474_v34 = vld [vmem:[#allocation2 + $0x68] sm:$0xff] }
 0x5e5   :  { %1294 = vmatprep.subr.bf16.mxu1 %v1817_v3  ;;  %v475_v35 = vld [vmem:[#allocation2 + $0x70] sm:$0xff]  ;;  %v476_v36 = vld [vmem:[#allocation2 + $0x78] sm:$0xff] }
 0x5e8   :  { %1295 = vmatpush3.bf16.msra.mxu1 %v470_v30 }
 0x5e9   :  { %1296 = vmatprep.subr.bf16.mxu1 %v1817_v3 }
 0x5ec   :  { %1297 = vmatpush3.bf16.msra.mxu1 %v471_v31 }
 0x5ed   :  { %1298 = vmatprep.subr.bf16.mxu1 %v1817_v3 }
 0x5f0   :  { %1299 = vmatpush3.bf16.msra.mxu1 %v472_v32 }
 0x5f1   :  { %1300 = vmatprep.subr.bf16.mxu1 %v1817_v3 }
 0x5f4   :  { %1301 = vmatpush3.bf16.msra.mxu1 %v473_v33 }
 0x5f5   :  { %1302 = vmatprep.subr.bf16.mxu1 %v1817_v3 }
 0x5f8   :  { %1303 = vmatpush3.bf16.msra.mxu1 %v474_v34 }
 0x5f9   :  { %1304 = vmatprep.subr.bf16.mxu1 %v1817_v3 }
 0x5fc   :  { %1305 = vmatpush3.bf16.msra.mxu1 %v475_v35 }
 0x5fd   :  { %1306 = vmatprep.subr.bf16.mxu1 %v1817_v3 }
 0x600   :  { %1307 = vmatpush3.bf16.msra.mxu1 %v476_v36 }
 0x603   :  { %1309 = vmatmul.mubr.bf16.vlgmr.msra.gmra.mrb[8].mxu1 %v468_v38 }
 0x6d6   :  { %v511_v39 = vpop.f32.mrb[8].mxu1 }
 0x6d7   :  { %v1310_v40 = vpop.f32.mrb[9].mxu1 }
 0x6d8   :  { %v514_v41 = vpop.f32.mrb[10].mxu1 }
 0x6d9   :  { %v1311_v42 = vpop.f32.mrb[11].mxu1 }
 0x6da   :  { %1802 = dma.done.wait [#allocation3], 1024 }
 0x6db   :  { %1803 = vsyncadd [#allocation3], 4294966272  ;;  %1312 = vmatprep.subr.bf16.mxu0 %v1817_v3  ;;  %1328 = vmatprep.mubr.msk.bf16.mxu0 %vm1819_vm1, %v1817_v3  ;;  %s2125_s12 = scalar_lea.hbm %s2335_s3, 8192  ;;  %p1643_p2 = scmp.lt.u32.totalorder %s2096_s5, %s2335_s3 }
 0x6dc   :  { %p1641_p6 = scmp.ne.s32.totalorder %s2096_s5, %s2125_s12  ;;  %p1644_p8 = scmp.lt.u32.totalorder %s1866_s25, %s2125_s12 }
 0x6dd   :  { %p1646_p11 = scmp.lt.u32.totalorder %s2125_s12, %s2096_s5 }
 0x6de   :  { %p1645_p10 = por %p1644_p8, %p1643_p2 }
 0x6e0   :  { %p1647_p12 = por %p1646_p11, %p1645_p10 }
 0x6e2   :  { %p1648_p13 = pnand %p1647_p12, %p1641_p6 }
 0x6e4   :  { %1651 = shalt.err (!%p1648_p13)  }
 0x6e5   :  { %1663 = shalt.err (!%p1927_p7)  }
 0x6e6   :  { %530 = dma.hbm_to_vmem [thread:$0]  %s2096_s5, 1024, %s1903_s10, [#allocation3 + $0x1]  ;;  %v531_v51 = vpack.c.bf16 %v511_v39, %v511_v39  ;;  %v597_v12 = vld [vmem:[%s2333_s1 + $0x3] sm:$0x1] }
 0x6e7   :  { %v532_v43 = vld [vmem:[#allocation2] sm:$0xff]  ;;  %v533_v44 = vld [vmem:[#allocation2 + $0x8] sm:$0xff]  ;;  %v534_v45 = vld [vmem:[#allocation2 + $0x10] sm:$0xff] }
 0x6e8   :  { %1313 = vmatpush3.bf16.msra.mxu0 %v532_v43  ;;  %v535_v46 = vld [vmem:[#allocation2 + $0x18] sm:$0xff]  ;;  %v536_v47 = vld [vmem:[#allocation2 + $0x20] sm:$0xff]  ;;  %v537_v48 = vld [vmem:[#allocation2 + $0x28] sm:$0xff] }
 0x6e9   :  { %1314 = vmatprep.subr.bf16.mxu0 %v1817_v3  ;;  %v538_v49 = vld [vmem:[#allocation2 + $0x30] sm:$0xff]  ;;  %v539_v50 = vld [vmem:[#allocation2 + $0x38] sm:$0xff]  ;;  %v1070_v16 = vld [vmem:[%s2334_s2 + $0x3] ss:$0 sm:$0xff] }
 0x6ec   :  { %1315 = vmatpush3.bf16.msra.mxu0 %v533_v44 }
 0x6ed   :  { %1316 = vmatprep.subr.bf16.mxu0 %v1817_v3 }
 0x6f0   :  { %1317 = vmatpush3.bf16.msra.mxu0 %v534_v45 }
 0x6f1   :  { %1318 = vmatprep.subr.bf16.mxu0 %v1817_v3 }
 0x6f4   :  { %1319 = vmatpush3.bf16.msra.mxu0 %v535_v46 }
 0x6f5   :  { %1320 = vmatprep.subr.bf16.mxu0 %v1817_v3 }
 0x6f8   :  { %1321 = vmatpush3.bf16.msra.mxu0 %v536_v47 }
 0x6f9   :  { %1322 = vmatprep.subr.bf16.mxu0 %v1817_v3 }
 0x6fc   :  { %1323 = vmatpush3.bf16.msra.mxu0 %v537_v48 }
 0x6fd   :  { %1324 = vmatprep.subr.bf16.mxu0 %v1817_v3 }
 0x700   :  { %1325 = vmatpush3.bf16.msra.mxu0 %v538_v49 }
 0x701   :  { %1326 = vmatprep.subr.bf16.mxu0 %v1817_v3 }
 0x704   :  { %1327 = vmatpush3.bf16.msra.mxu0 %v539_v50 }
 0x707   :  { %1329 = vmatmul.mubr.bf16.vlgmr.msra.gmra.mrb[12].mxu0 %v531_v51 }
 0x7da   :  { %v574_v52 = vpop.f32.mrb[12].mxu0 }
 0x7db   :  { %v580_v53 = vrot.slane %v574_v52, 4  ;;  %v1330_v54 = vpop.f32.mrb[13].mxu0 }
 0x7dc   :  { %v577_v55 = vpop.f32.mrb[14].mxu0 }
 0x7dd   :  { %v581_v56 = vadd.f32 %v580_v53, %v574_v52  ;;  %v1331_v57 = vpop.f32.mrb[15].mxu0 }
 0x7df   :  { %v582_v58 = vrot.slane %v581_v56, 2 }
 0x7e1   :  { %v583_v59 = vadd.f32 %v582_v58, %v581_v56 }
 0x7e3   :  { %v584_v60 = vrot.slane %v583_v59, 1 }
 0x7e5   :  { %v585_v61 = vadd.f32 %v584_v60, %v583_v59 }
 0x7e7   :  { %v586_v62 = vmul.f32 0.5, %v585_v61 }
 0x7e9   :  { %v587_v63 = vsub.f32 %v574_v52, %v586_v62 }
 0x7eb   :  { %v588_v0 = vmul.f32 %v1898_v4, %v587_v63 }
 0x7ed   :  { %v589_v1 = vmul.f32 %v588_v0, %v588_v0 }
 0x7ef   :  { %v590_v2 = vrot.slane %v589_v1, 4 }
 0x7f1   :  { %v591_v5 = vadd.f32 %v590_v2, %v589_v1 }
 0x7f3   :  { %v592_v6 = vrot.slane %v591_v5, 2 }
 0x7f5   :  { %v593_v7 = vadd.f32 %v592_v6, %v591_v5 }
 0x7f7   :  { %v594_v8 = vrot.slane %v593_v7, 1 }
 0x7f9   :  { %v595_v9 = vadd.f32 %v594_v8, %v593_v7 }
 0x7fb   :  { %v596_v10 = vmul.f32 0.5, %v595_v9 }
 0x7fd   :  { %v598_v11 = vadd.f32 1e-05, %v596_v10 }
 0x7ff   :  { %1462 = vrsqrt.f32 %v598_v11 }
 0x809   :  { %v1463_v13 = vpop.eup %1462 }
 0x80a   :  { %v600_v14 = vmul.f32 %v1463_v13, %v597_v12 }
 0x80c   :  { %v604_v15 = vrot.slane %v600_v14, %v1949_v37 }
 0x80e   :  { %v605_v17 = vmul.f32 %v604_v15, %v588_v0 }
 0x810   :  { %v611_v18 = vadd.f32 %v1070_v16, %v605_v17 }
 0x812   :  { %v612_v19 = vmax.f32 %v611_v18, 0.0 }
 0x814   :  { %v613_v20 = vmul.f32 %v1898_v4, %v612_v19 }
 0x815   :  { %1804 = dma.done.wait [#allocation3 + $0x1], 1024 }
 0x816   :  { %1805 = vsyncadd [#allocation3 + $0x1], 4294966272  ;;  %1332 = vmatprep.subr.bf16.mxu1 %v1817_v3  ;;  %1348 = vmatprep.mubr.msk.bf16.mxu1 %vm1819_vm1, %v1817_v3  ;;  %s2163_s23 = scalar_lea.hbm %s2335_s3, 9216  ;;  %p1668_p1 = scmp.lt.u32.totalorder %s2125_s12, %s2335_s3 }
 0x817   :  { %p1666_p0 = scmp.ne.s32.totalorder %s2125_s12, %s2163_s23  ;;  %p1669_p3 = scmp.lt.u32.totalorder %s1866_s25, %s2163_s23 }
 0x818   :  { %p1671_p5 = scmp.lt.u32.totalorder %s2163_s23, %s2125_s12 }
 0x819   :  { %p1670_p4 = por %p1669_p3, %p1668_p1 }
 0x81b   :  { %p1672_p6 = por %p1671_p5, %p1670_p4 }
 0x81d   :  { %p1673_p2 = pnand %p1672_p6, %p1666_p0 }
 0x81f   :  { %1676 = shalt.err (!%p1673_p2)  }
 0x820   :  { %1688 = shalt.err (!%p1886_p9)  }
 0x821   :  { %627 = dma.hbm_to_vmem [thread:$0]  %s2125_s12, 1024, %s1852_s18, [#allocation3]  ;;  %v628_v29 = vpack.c.bf16 %v613_v20, %v613_v20 }
 0x822   :  { %v629_v21 = vld [vmem:[#allocation2 + $0x40] sm:$0xff]  ;;  %v630_v22 = vld [vmem:[#allocation2 + $0x48] sm:$0xff]  ;;  %v631_v23 = vld [vmem:[#allocation2 + $0x50] sm:$0xff] }
 0x823   :  { %1333 = vmatpush3.bf16.msra.mxu1 %v629_v21  ;;  %v632_v24 = vld [vmem:[#allocation2 + $0x58] sm:$0xff]  ;;  %v633_v25 = vld [vmem:[#allocation2 + $0x60] sm:$0xff]  ;;  %v634_v26 = vld [vmem:[#allocation2 + $0x68] sm:$0xff] }
 0x824   :  { %1334 = vmatprep.subr.bf16.mxu1 %v1817_v3  ;;  %v635_v27 = vld [vmem:[#allocation2 + $0x70] sm:$0xff]  ;;  %v636_v28 = vld [vmem:[#allocation2 + $0x78] sm:$0xff] }
 0x827   :  { %1335 = vmatpush3.bf16.msra.mxu1 %v630_v22 }
 0x828   :  { %1336 = vmatprep.subr.bf16.mxu1 %v1817_v3 }
 0x82b   :  { %1337 = vmatpush3.bf16.msra.mxu1 %v631_v23 }
 0x82c   :  { %1338 = vmatprep.subr.bf16.mxu1 %v1817_v3 }
 0x82f   :  { %1339 = vmatpush3.bf16.msra.mxu1 %v632_v24 }
 0x830   :  { %1340 = vmatprep.subr.bf16.mxu1 %v1817_v3 }
 0x833   :  { %1341 = vmatpush3.bf16.msra.mxu1 %v633_v25 }
 0x834   :  { %1342 = vmatprep.subr.bf16.mxu1 %v1817_v3 }
 0x837   :  { %1343 = vmatpush3.bf16.msra.mxu1 %v634_v26 }
 0x838   :  { %1344 = vmatprep.subr.bf16.mxu1 %v1817_v3 }
 0x83b   :  { %1345 = vmatpush3.bf16.msra.mxu1 %v635_v27 }
 0x83c   :  { %1346 = vmatprep.subr.bf16.mxu1 %v1817_v3 }
 0x83f   :  { %1347 = vmatpush3.bf16.msra.mxu1 %v636_v28 }
 0x842   :  { %1349 = vmatmul.mubr.bf16.vlgmr.msra.gmra.mrb[12].mxu1 %v628_v29 }
 0x915   :  { %v671_v30 = vpop.f32.mrb[12].mxu1 }
 0x916   :  { %v1350_v31 = vpop.f32.mrb[13].mxu1 }
 0x917   :  { %v674_v32 = vpop.f32.mrb[14].mxu1 }
 0x918   :  { %v1351_v33 = vpop.f32.mrb[15].mxu1 }
 0x919   :  { %1806 = dma.done.wait [#allocation3], 1024 }
 0x91a   :  { %1807 = vsyncadd [#allocation3], 4294966272  ;;  %1352 = vmatprep.subr.bf16.mxu0 %v1817_v3  ;;  %1368 = vmatprep.mubr.msk.bf16.mxu0 %vm1819_vm1, %v1817_v3  ;;  %s2192_s28 = scalar_lea.hbm %s2335_s3, 10240  ;;  %p1693_p10 = scmp.lt.u32.totalorder %s2163_s23, %s2335_s3 }
 0x91b   :  { %p1691_p8 = scmp.ne.s32.totalorder %s2163_s23, %s2192_s28  ;;  %p1694_p11 = scmp.lt.u32.totalorder %s1866_s25, %s2192_s28 }
 0x91c   :  { %p1696_p13 = scmp.lt.u32.totalorder %s2192_s28, %s2163_s23 }
 0x91d   :  { %p1695_p12 = por %p1694_p11, %p1693_p10 }
 0x91f   :  { %p1697_p0 = por %p1696_p13, %p1695_p12 }
 0x921   :  { %p1698_p1 = pnand %p1697_p0, %p1691_p8 }
 0x923   :  { %1701 = shalt.err (!%p1698_p1)  }
 0x924   :  { %1713 = shalt.err (!%p1927_p7)  }
 0x925   :  { %690 = dma.hbm_to_vmem [thread:$0]  %s2163_s23, 1024, %s1903_s10, [#allocation3 + $0x1]  ;;  %v691_v43 = vpack.c.bf16 %v671_v30, %v671_v30  ;;  %v757_v2 = vld [vmem:[%s2333_s1 + $0x4] sm:$0x1] }
 0x926   :  { %v692_v34 = vld [vmem:[#allocation2] sm:$0xff]  ;;  %v693_v35 = vld [vmem:[#allocation2 + $0x8] sm:$0xff]  ;;  %v694_v36 = vld [vmem:[#allocation2 + $0x10] sm:$0xff] }
 0x927   :  { %1353 = vmatpush3.bf16.msra.mxu0 %v692_v34  ;;  %v695_v38 = vld [vmem:[#allocation2 + $0x18] sm:$0xff]  ;;  %v696_v39 = vld [vmem:[#allocation2 + $0x20] sm:$0xff]  ;;  %v697_v40 = vld [vmem:[#allocation2 + $0x28] sm:$0xff] }
 0x928   :  { %1354 = vmatprep.subr.bf16.mxu0 %v1817_v3  ;;  %v698_v41 = vld [vmem:[#allocation2 + $0x30] sm:$0xff]  ;;  %v699_v42 = vld [vmem:[#allocation2 + $0x38] sm:$0xff]  ;;  %v1071_v8 = vld [vmem:[%s2334_s2 + $0x4] ss:$0 sm:$0xff] }
 0x92b   :  { %1355 = vmatpush3.bf16.msra.mxu0 %v693_v35 }
 0x92c   :  { %1356 = vmatprep.subr.bf16.mxu0 %v1817_v3 }
 0x92f   :  { %1357 = vmatpush3.bf16.msra.mxu0 %v694_v36 }
 0x930   :  { %1358 = vmatprep.subr.bf16.mxu0 %v1817_v3 }
 0x933   :  { %1359 = vmatpush3.bf16.msra.mxu0 %v695_v38 }
 0x934   :  { %1360 = vmatprep.subr.bf16.mxu0 %v1817_v3 }
 0x937   :  { %1361 = vmatpush3.bf16.msra.mxu0 %v696_v39 }
 0x938   :  { %1362 = vmatprep.subr.bf16.mxu0 %v1817_v3 }
 0x93b   :  { %1363 = vmatpush3.bf16.msra.mxu0 %v697_v40 }
 0x93c   :  { %1364 = vmatprep.subr.bf16.mxu0 %v1817_v3 }
 0x93f   :  { %1365 = vmatpush3.bf16.msra.mxu0 %v698_v41 }
 0x940   :  { %1366 = vmatprep.subr.bf16.mxu0 %v1817_v3 }
 0x943   :  { %1367 = vmatpush3.bf16.msra.mxu0 %v699_v42 }
 0x946   :  { %1369 = vmatmul.mubr.bf16.vlgmr.msra.gmra.mrb[16].mxu0 %v691_v43 }
 0xa19   :  { %v734_v44 = vpop.f32.mrb[16].mxu0 }
 0xa1a   :  { %v740_v45 = vrot.slane %v734_v44, 4  ;;  %v1370_v46 = vpop.f32.mrb[17].mxu0 }
 0xa1b   :  { %v737_v47 = vpop.f32.mrb[18].mxu0 }
 0xa1c   :  { %v741_v48 = vadd.f32 %v740_v45, %v734_v44  ;;  %v1371_v49 = vpop.f32.mrb[19].mxu0 }
 0xa1e   :  { %v742_v50 = vrot.slane %v741_v48, 2 }
 0xa20   :  { %v743_v51 = vadd.f32 %v742_v50, %v741_v48 }
 0xa22   :  { %v744_v52 = vrot.slane %v743_v51, 1 }
 0xa24   :  { %v745_v53 = vadd.f32 %v744_v52, %v743_v51 }
 0xa26   :  { %v746_v54 = vmul.f32 0.5, %v745_v53 }
 0xa28   :  { %v747_v55 = vsub.f32 %v734_v44, %v746_v54 }
 0xa2a   :  { %v748_v56 = vmul.f32 %v1898_v4, %v747_v55 }
 0xa2c   :  { %v749_v57 = vmul.f32 %v748_v56, %v748_v56 }
 0xa2e   :  { %v750_v58 = vrot.slane %v749_v57, 4 }
 0xa30   :  { %v751_v59 = vadd.f32 %v750_v58, %v749_v57 }
 0xa32   :  { %v752_v60 = vrot.slane %v751_v59, 2 }
 0xa34   :  { %v753_v61 = vadd.f32 %v752_v60, %v751_v59 }
 0xa36   :  { %v754_v62 = vrot.slane %v753_v61, 1 }
 0xa38   :  { %v755_v63 = vadd.f32 %v754_v62, %v753_v61 }
 0xa3a   :  { %v756_v0 = vmul.f32 0.5, %v755_v63 }
 0xa3c   :  { %v758_v1 = vadd.f32 1e-05, %v756_v0 }
 0xa3e   :  { %1464 = vrsqrt.f32 %v758_v1 }
 0xa48   :  { %v1465_v5 = vpop.eup %1464 }
 0xa49   :  { %v760_v6 = vmul.f32 %v1465_v5, %v757_v2 }
 0xa4b   :  { %v764_v7 = vrot.slane %v760_v6, %v1949_v37 }
 0xa4d   :  { %v765_v9 = vmul.f32 %v764_v7, %v748_v56 }
 0xa4f   :  { %v771_v10 = vadd.f32 %v1071_v8, %v765_v9 }
 0xa51   :  { %v772_v11 = vmax.f32 %v771_v10, 0.0 }
 0xa53   :  { %v773_v12 = vmul.f32 %v1898_v4, %v772_v11 }
 0xa54   :  { %1808 = dma.done.wait [#allocation3 + $0x1], 1024 }
 0xa55   :  { %1809 = vsyncadd [#allocation3 + $0x1], 4294966272  ;;  %1372 = vmatprep.subr.bf16.mxu1 %v1817_v3  ;;  %1388 = vmatprep.mubr.msk.bf16.mxu1 %vm1819_vm1, %v1817_v3  ;;  %s2230_s13 = scalar_lea.hbm %s2335_s3, 11264  ;;  %p1718_p4 = scmp.lt.u32.totalorder %s2192_s28, %s2335_s3 }
 0xa56   :  { %p1716_p3 = scmp.ne.s32.totalorder %s2192_s28, %s2230_s13  ;;  %p1719_p5 = scmp.lt.u32.totalorder %s1866_s25, %s2230_s13 }
 0xa57   :  { %p1721_p2 = scmp.lt.u32.totalorder %s2230_s13, %s2192_s28 }
 0xa58   :  { %p1720_p6 = por %p1719_p5, %p1718_p4 }
 0xa5a   :  { %p1722_p8 = por %p1721_p2, %p1720_p6 }
 0xa5c   :  { %p1723_p10 = pnand %p1722_p8, %p1716_p3 }
 0xa5e   :  { %1726 = shalt.err (!%p1723_p10)  }
 0xa5f   :  { %1738 = shalt.err (!%p1886_p9)  }
 0xa60   :  { %787 = dma.hbm_to_vmem [thread:$0]  %s2192_s28, 1024, %s1852_s18, [#allocation3]  ;;  %v788_v21 = vpack.c.bf16 %v773_v12, %v773_v12 }
 0xa61   :  { %v789_v13 = vld [vmem:[#allocation2 + $0x40] sm:$0xff]  ;;  %v790_v14 = vld [vmem:[#allocation2 + $0x48] sm:$0xff]  ;;  %v791_v15 = vld [vmem:[#allocation2 + $0x50] sm:$0xff] }
 0xa62   :  { %1373 = vmatpush3.bf16.msra.mxu1 %v789_v13  ;;  %v792_v16 = vld [vmem:[#allocation2 + $0x58] sm:$0xff]  ;;  %v793_v17 = vld [vmem:[#allocation2 + $0x60] sm:$0xff]  ;;  %v794_v18 = vld [vmem:[#allocation2 + $0x68] sm:$0xff] }
 0xa63   :  { %1374 = vmatprep.subr.bf16.mxu1 %v1817_v3  ;;  %v795_v19 = vld [vmem:[#allocation2 + $0x70] sm:$0xff]  ;;  %v796_v20 = vld [vmem:[#allocation2 + $0x78] sm:$0xff] }
 0xa66   :  { %1375 = vmatpush3.bf16.msra.mxu1 %v790_v14 }
 0xa67   :  { %1376 = vmatprep.subr.bf16.mxu1 %v1817_v3 }
 0xa6a   :  { %1377 = vmatpush3.bf16.msra.mxu1 %v791_v15 }
 0xa6b   :  { %1378 = vmatprep.subr.bf16.mxu1 %v1817_v3 }
 0xa6e   :  { %1379 = vmatpush3.bf16.msra.mxu1 %v792_v16 }
 0xa6f   :  { %1380 = vmatprep.subr.bf16.mxu1 %v1817_v3 }
 0xa72   :  { %1381 = vmatpush3.bf16.msra.mxu1 %v793_v17 }
 0xa73   :  { %1382 = vmatprep.subr.bf16.mxu1 %v1817_v3 }
 0xa76   :  { %1383 = vmatpush3.bf16.msra.mxu1 %v794_v18 }
 0xa77   :  { %1384 = vmatprep.subr.bf16.mxu1 %v1817_v3 }
 0xa7a   :  { %1385 = vmatpush3.bf16.msra.mxu1 %v795_v19 }
 0xa7b   :  { %1386 = vmatprep.subr.bf16.mxu1 %v1817_v3 }
 0xa7e   :  { %1387 = vmatpush3.bf16.msra.mxu1 %v796_v20 }
 0xa81   :  { %1389 = vmatmul.mubr.bf16.vlgmr.msra.gmra.mrb[16].mxu1 %v788_v21 }
 0xb54   :  { %v831_v22 = vpop.f32.mrb[16].mxu1 }
 0xb55   :  { %v1390_v23 = vpop.f32.mrb[17].mxu1 }
 0xb56   :  { %v834_v24 = vpop.f32.mrb[18].mxu1 }
 0xb57   :  { %v1391_v25 = vpop.f32.mrb[19].mxu1 }
 0xb58   :  { %1810 = dma.done.wait [#allocation3], 1024 }
 0xb59   :  { %1811 = vsyncadd [#allocation3], 4294966272  ;;  %1392 = vmatprep.subr.bf16.mxu0 %v1817_v3  ;;  %1408 = vmatprep.mubr.msk.bf16.mxu0 %vm1819_vm1, %v1817_v3  ;;  %s2259_s20 = scalar_lea.hbm %s2335_s3, 12288  ;;  %p1743_p12 = scmp.lt.u32.totalorder %s2230_s13, %s2335_s3 }
 0xb5a   :  { %p1741_p11 = scmp.ne.s32.totalorder %s2230_s13, %s2259_s20  ;;  %p1744_p13 = scmp.lt.u32.totalorder %s1866_s25, %s2259_s20 }
 0xb5b   :  { %p1746_p1 = scmp.lt.u32.totalorder %s2259_s20, %s2230_s13 }
 0xb5c   :  { %p1745_p0 = por %p1744_p13, %p1743_p12 }
 0xb5e   :  { %p1747_p3 = por %p1746_p1, %p1745_p0 }
 0xb60   :  { %p1748_p4 = pnand %p1747_p3, %p1741_p11 }
 0xb62   :  { %1751 = shalt.err (!%p1748_p4)  }
 0xb63   :  { %1763 = shalt.err (!%p1927_p7)  }
 0xb64   :  { %850 = dma.hbm_to_vmem [thread:$0]  %s2230_s13, 1024, %s1903_s10, [#allocation3 + $0x1]  ;;  %v851_v34 = vpack.c.bf16 %v831_v22, %v831_v22  ;;  %v917_v58 = vld [vmem:[%s2333_s1 + $0x5] sm:$0x1] }
 0xb65   :  { %v852_v26 = vld [vmem:[#allocation2] sm:$0xff]  ;;  %v853_v27 = vld [vmem:[#allocation2 + $0x8] sm:$0xff]  ;;  %v854_v28 = vld [vmem:[#allocation2 + $0x10] sm:$0xff] }
 0xb66   :  { %1393 = vmatpush3.bf16.msra.mxu0 %v852_v26  ;;  %v855_v29 = vld [vmem:[#allocation2 + $0x18] sm:$0xff]  ;;  %v856_v30 = vld [vmem:[#allocation2 + $0x20] sm:$0xff]  ;;  %v857_v31 = vld [vmem:[#allocation2 + $0x28] sm:$0xff] }
 0xb67   :  { %1394 = vmatprep.subr.bf16.mxu0 %v1817_v3  ;;  %v858_v32 = vld [vmem:[#allocation2 + $0x30] sm:$0xff]  ;;  %v859_v33 = vld [vmem:[#allocation2 + $0x38] sm:$0xff]  ;;  %v1072_v62 = vld [vmem:[%s2334_s2 + $0x5] ss:$0 sm:$0xff] }
 0xb6a   :  { %1395 = vmatpush3.bf16.msra.mxu0 %v853_v27 }
 0xb6b   :  { %1396 = vmatprep.subr.bf16.mxu0 %v1817_v3 }
 0xb6e   :  { %1397 = vmatpush3.bf16.msra.mxu0 %v854_v28 }
 0xb6f   :  { %1398 = vmatprep.subr.bf16.mxu0 %v1817_v3 }
 0xb72   :  { %1399 = vmatpush3.bf16.msra.mxu0 %v855_v29 }
 0xb73   :  { %1400 = vmatprep.subr.bf16.mxu0 %v1817_v3 }
 0xb76   :  { %1401 = vmatpush3.bf16.msra.mxu0 %v856_v30 }
 0xb77   :  { %1402 = vmatprep.subr.bf16.mxu0 %v1817_v3 }
 0xb7a   :  { %1403 = vmatpush3.bf16.msra.mxu0 %v857_v31 }
 0xb7b   :  { %1404 = vmatprep.subr.bf16.mxu0 %v1817_v3 }
 0xb7e   :  { %1405 = vmatpush3.bf16.msra.mxu0 %v858_v32 }
 0xb7f   :  { %1406 = vmatprep.subr.bf16.mxu0 %v1817_v3 }
 0xb82   :  { %1407 = vmatpush3.bf16.msra.mxu0 %v859_v33 }
 0xb85   :  { %1409 = vmatmul.mubr.bf16.vlgmr.msra.gmra.mrb[20].mxu0 %v851_v34 }
 0xc58   :  { %v894_v35 = vpop.f32.mrb[20].mxu0 }
 0xc59   :  { %v900_v36 = vrot.slane %v894_v35, 4  ;;  %v1410_v38 = vpop.f32.mrb[21].mxu0 }
 0xc5a   :  { %v897_v39 = vpop.f32.mrb[22].mxu0 }
 0xc5b   :  { %v901_v40 = vadd.f32 %v900_v36, %v894_v35  ;;  %v1411_v41 = vpop.f32.mrb[23].mxu0 }
 0xc5d   :  { %v902_v42 = vrot.slane %v901_v40, 2 }
 0xc5f   :  { %v903_v43 = vadd.f32 %v902_v42, %v901_v40 }
 0xc61   :  { %v904_v44 = vrot.slane %v903_v43, 1 }
 0xc63   :  { %v905_v45 = vadd.f32 %v904_v44, %v903_v43 }
 0xc65   :  { %v906_v46 = vmul.f32 0.5, %v905_v45 }
 0xc67   :  { %v907_v47 = vsub.f32 %v894_v35, %v906_v46 }
 0xc69   :  { %v908_v48 = vmul.f32 %v1898_v4, %v907_v47 }
 0xc6b   :  { %v909_v49 = vmul.f32 %v908_v48, %v908_v48 }
 0xc6d   :  { %v910_v50 = vrot.slane %v909_v49, 4 }
 0xc6f   :  { %v911_v51 = vadd.f32 %v910_v50, %v909_v49 }
 0xc71   :  { %v912_v52 = vrot.slane %v911_v51, 2 }
 0xc73   :  { %v913_v53 = vadd.f32 %v912_v52, %v911_v51 }
 0xc75   :  { %v914_v54 = vrot.slane %v913_v53, 1 }
 0xc77   :  { %v915_v55 = vadd.f32 %v914_v54, %v913_v53 }
 0xc79   :  { %v916_v56 = vmul.f32 0.5, %v915_v55 }
 0xc7b   :  { %v918_v57 = vadd.f32 1e-05, %v916_v56 }
 0xc7d   :  { %1466 = vrsqrt.f32 %v918_v57 }
 0xc87   :  { %v1467_v59 = vpop.eup %1466 }
 0xc88   :  { %v920_v60 = vmul.f32 %v1467_v59, %v917_v58 }
 0xc8a   :  { %v924_v61 = vrot.slane %v920_v60, %v1949_v37 }
 0xc8c   :  { %v925_v63 = vmul.f32 %v924_v61, %v908_v48 }
 0xc8e   :  { %v931_v0 = vadd.f32 %v1072_v62, %v925_v63 }
 0xc90   :  { %v932_v1 = vmax.f32 %v931_v0, 0.0 }
 0xc92   :  { %v933_v2 = vmul.f32 %v1898_v4, %v932_v1 }
 0xc93   :  { %1812 = dma.done.wait [#allocation3 + $0x1], 1024 }
 0xc94   :  { %1813 = vsyncadd [#allocation3 + $0x1], 4294966272  ;;  %1412 = vmatprep.subr.bf16.mxu1 %v1817_v3  ;;  %1428 = vmatprep.mubr.msk.bf16.mxu1 %vm1819_vm1, %v1817_v3  ;;  %p1766_p7 = scmp.ne.s32.totalorder %s2259_s20, %s1866_s25  ;;  %p1768_p5 = scmp.lt.u32.totalorder %s2259_s20, %s2335_s3 }
 0xc95   :  { %p1769_p6 = scmp.lt.u32.totalorder %s1866_s25, %s1866_s25 }
 0xc97   :  { %p1770_p2 = por %p1769_p6, %p1768_p5 }
 0xc99   :  { %p1772_p8 = por %p1770_p2, %p1744_p13 }
 0xc9b   :  { %p1773_p10 = pnand %p1772_p8, %p1766_p7 }
 0xc9d   :  { %1776 = shalt.err (!%p1773_p10)  }
 0xc9e   :  { %1788 = shalt.err (!%p1886_p9)  }
 0xc9f   :  { %947 = dma.hbm_to_vmem [thread:$0]  %s2259_s20, 1024, %s1852_s18, [#allocation3]  ;;  %v948_v11 = vpack.c.bf16 %v933_v2, %v933_v2 }
 0xca0   :  { %v949_v4 = vld [vmem:[#allocation2 + $0x40] sm:$0xff]  ;;  %v950_v37 = vld [vmem:[#allocation2 + $0x48] sm:$0xff]  ;;  %v951_v5 = vld [vmem:[#allocation2 + $0x50] sm:$0xff] }
 0xca1   :  { %1413 = vmatpush3.bf16.msra.mxu1 %v949_v4  ;;  %v952_v6 = vld [vmem:[#allocation2 + $0x58] sm:$0xff]  ;;  %v953_v7 = vld [vmem:[#allocation2 + $0x60] sm:$0xff]  ;;  %v954_v8 = vld [vmem:[#allocation2 + $0x68] sm:$0xff] }
 0xca2   :  { %1414 = vmatprep.subr.bf16.mxu1 %v1817_v3  ;;  %v955_v9 = vld [vmem:[#allocation2 + $0x70] sm:$0xff]  ;;  %v956_v10 = vld [vmem:[#allocation2 + $0x78] sm:$0xff] }
 0xca5   :  { %1415 = vmatpush3.bf16.msra.mxu1 %v950_v37 }
 0xca6   :  { %1416 = vmatprep.subr.bf16.mxu1 %v1817_v3 }
 0xca9   :  { %1417 = vmatpush3.bf16.msra.mxu1 %v951_v5 }
 0xcaa   :  { %1418 = vmatprep.subr.bf16.mxu1 %v1817_v3 }
 0xcad   :  { %1419 = vmatpush3.bf16.msra.mxu1 %v952_v6 }
 0xcae   :  { %1420 = vmatprep.subr.bf16.mxu1 %v1817_v3 }
 0xcb1   :  { %1421 = vmatpush3.bf16.msra.mxu1 %v953_v7 }
 0xcb2   :  { %1422 = vmatprep.subr.bf16.mxu1 %v1817_v3 }
 0xcb5   :  { %1423 = vmatpush3.bf16.msra.mxu1 %v954_v8 }
 0xcb6   :  { %1424 = vmatprep.subr.bf16.mxu1 %v1817_v3 }
 0xcb9   :  { %1425 = vmatpush3.bf16.msra.mxu1 %v955_v9 }
 0xcba   :  { %1426 = vmatprep.subr.bf16.mxu1 %v1817_v3 }
 0xcbd   :  { %1427 = vmatpush3.bf16.msra.mxu1 %v956_v10 }
 0xcc0   :  { %1429 = vmatmul.mubr.bf16.vlgmr.msra.gmra.mrb[20].mxu1 %v948_v11 }
 0xd93   :  { %v991_v12 = vpop.f32.mrb[20].mxu1 }
 0xd94   :  { %v1430_v13 = vpop.f32.mrb[21].mxu1 }
 0xd95   :  { %v994_v14 = vpop.f32.mrb[22].mxu1 }
 0xd96   :  { %v1431_v15 = vpop.f32.mrb[23].mxu1 }
 0xd97   :  { %1814 = dma.done.wait [#allocation3], 1024 }
 0xd98   :  { %1815 = vsyncadd [#allocation3], 4294966272  ;;  %1432 = vmatprep.subr.bf16.mxu0 %v1817_v3  ;;  %1448 = vmatprep.mubr.msk.bf16.mxu0 %vm1819_vm1, %v1817_v3  ;;  %v1000_v16 = vld [vmem:[#allocation2] sm:$0xff]  ;;  %v1001_v17 = vld [vmem:[#allocation2 + $0x8] sm:$0xff]  ;;  %v999_v24 = vpack.c.bf16 %v991_v12, %v991_v12 }
 0xd99   :  { %1433 = vmatpush3.bf16.msra.mxu0 %v1000_v16  ;;  %v1002_v18 = vld [vmem:[#allocation2 + $0x10] sm:$0xff]  ;;  %v1003_v19 = vld [vmem:[#allocation2 + $0x18] sm:$0xff]  ;;  %v1004_v20 = vld [vmem:[#allocation2 + $0x20] sm:$0xff] }
 0xd9a   :  { %1434 = vmatprep.subr.bf16.mxu0 %v1817_v3  ;;  %v1005_v21 = vld [vmem:[#allocation2 + $0x28] sm:$0xff]  ;;  %v1006_v22 = vld [vmem:[#allocation2 + $0x30] sm:$0xff]  ;;  %v1007_v23 = vld [vmem:[#allocation2 + $0x38] sm:$0xff] }
 0xd9d   :  { %1435 = vmatpush3.bf16.msra.mxu0 %v1001_v17 }
 0xd9e   :  { %1436 = vmatprep.subr.bf16.mxu0 %v1817_v3 }
 0xda1   :  { %1437 = vmatpush3.bf16.msra.mxu0 %v1002_v18 }
 0xda2   :  { %1438 = vmatprep.subr.bf16.mxu0 %v1817_v3 }
 0xda5   :  { %1439 = vmatpush3.bf16.msra.mxu0 %v1003_v19 }
 0xda6   :  { %1440 = vmatprep.subr.bf16.mxu0 %v1817_v3 }
 0xda9   :  { %1441 = vmatpush3.bf16.msra.mxu0 %v1004_v20 }
 0xdaa   :  { %1442 = vmatprep.subr.bf16.mxu0 %v1817_v3 }
 0xdad   :  { %1443 = vmatpush3.bf16.msra.mxu0 %v1005_v21 }
 0xdae   :  { %1444 = vmatprep.subr.bf16.mxu0 %v1817_v3 }
 0xdb1   :  { %1445 = vmatpush3.bf16.msra.mxu0 %v1006_v22 }
 0xdb2   :  { %1446 = vmatprep.subr.bf16.mxu0 %v1817_v3 }
 0xdb5   :  { %1447 = vmatpush3.bf16.msra.mxu0 %v1007_v23 }
 0xdb8   :  { %1449 = vmatmul.mubr.bf16.vlgmr.msra.gmra.mrb[24].mxu0 %v999_v24 }
 0xe8b   :  { %v1042_v25 = vpop.f32.mrb[24].mxu0 }
 0xe8c   :  { %1048 = vst [vmem:[%s2336_s4] sm:$0xff] %v1042_v25  ;;  %v1450_v26 = vpop.f32.mrb[25].mxu0 }
 0xe8d   :  { %v1045_v27 = vpop.f32.mrb[26].mxu0 }
 0xe8e   :  { %v1451_v28 = vpop.f32.mrb[27].mxu0 }
 0xe8f   :  { %1053 = vsyncmov [#allocation3] }
 0xe92   :  { %s1054_s25 = vpop.sfrf %1053 }
 0xe93   :  { %p1073_p9 = scmp.ne.s32.totalorder %s1054_s25, 0 }
 0xe95   :  { %1058 = shalt.err (%p1073_p9)  }
 0xe96   :  { %1060 = vsyncmov [#allocation3 + $0x1] }
 0xe99   :  { %s1061_s6 = vpop.sfrf %1060 }
 0xe9a   :  { %p1074_p11 = scmp.ne.s32.totalorder %s1061_s6, 0 }
 0xe9c   :  { %1065 = shalt.err (%p1074_p11)  }

</bundles_post_ra>
